<compile_context>
chip_gen: v5e
topology: v5e:2x2
jax: 0.10.0
libtpu: 0.0.40
codegen_flags: <defaults>
</compile_context>

<pallas_src>
import functools
import math

import jax
import jax.numpy as jnp
from jax import lax
from jax.experimental import pallas as pl
from jax.experimental.pallas import tpu as pltpu

_MATMUL_DTYPE = jnp.bfloat16   # MXU operand dtype; accumulation stays f32
_LN_EPS = 1e-5


# -----------------------------------------------------------------------------
# In-kernel building blocks (operate on values, everything stays on-chip)
# -----------------------------------------------------------------------------
def _conv1d_same(x, w, b, *, circular):
    """'same' Conv1d on a (L, Cin) activation.  w: (K, Cin, Cout), K odd."""
    L, Cin = x.shape
    K, _, Cout = w.shape
    half = (K - 1) // 2
    if half > 0:
        if circular:
            xp = jnp.concatenate([x[L - half:], x, x[:half]], axis=0)
        else:
            zpad = jnp.zeros((half, Cin), x.dtype)
            xp = jnp.concatenate([zpad, x, zpad], axis=0)
    else:
        xp = x
    xp = xp.astype(_MATMUL_DTYPE)
    # Start the accumulator from the (broadcast) bias: one fewer VPU add.
    if b is None:
        acc = jnp.zeros((L, Cout), jnp.float32)
    else:
        acc = jnp.broadcast_to(b[None, :], (L, Cout)).astype(jnp.float32)
    for k in range(K):  # K is small and static -> fully unrolled, LLO-visible
        acc = acc + jnp.dot(xp[k:k + L], w[k],
                            preferred_element_type=jnp.float32)
    return acc


def _layer_norm(x, gamma, beta):
    mu = jnp.mean(x, axis=-1, keepdims=True)
    var = jnp.mean(jnp.square(x - mu), axis=-1, keepdims=True)
    return (x - mu) * lax.rsqrt(var + _LN_EPS) * gamma[None, :] + beta[None, :]


def _encoder_layer(x, wqkv, bqkv, wo, bo, g1, b1, wd, bd, g2, b2, num_heads):
    """ConvAttentionLayer + residual/LN1 + downsample conv + ReLU + LN2."""
    L, d = x.shape
    dh = d // num_heads
    scale = 1.0 / math.sqrt(dh)

    # Fused Q|K|V conv projection: one conv, 3*d output channels.
    qkv = _conv1d_same(x, wqkv, bqkv, circular=False)          # (L, 3d) f32
    q, k, v = qkv[:, :d], qkv[:, d:2 * d], qkv[:, 2 * d:]
    qb = (q * scale).astype(_MATMUL_DTYPE)
    kb = k.astype(_MATMUL_DTYPE)
    vb = v.astype(_MATMUL_DTYPE)

    attn = jnp.zeros((L, d), jnp.float32)
    for h in range(num_heads):  # heads are few and static -> unrolled
        sl = slice(h * dh, (h + 1) * dh)
        # scores = (q_h * scale) @ k_h^T via dimension_numbers (no transpose).
        s = lax.dot_general(qb[:, sl], kb[:, sl],
                            dimension_numbers=(((1,), (1,)), ((), ())),
                            preferred_element_type=jnp.float32)
        s = s - jnp.max(s, axis=-1, keepdims=True)
        p = jnp.exp(s)
        p = p * pl.reciprocal(jnp.sum(p, axis=-1, keepdims=True), approx=True)
        oh = jnp.dot(p.astype(_MATMUL_DTYPE), vb[:, sl],
                     preferred_element_type=jnp.float32)
        # Fold the per-head rows of the 1x1 output-projection conv here;
        # avoids materializing / lane-concatenating per-head outputs.
        attn = attn + jnp.dot(oh.astype(_MATMUL_DTYPE), wo[sl, :],
                              preferred_element_type=jnp.float32)
    attn = attn + bo[None, :]

    y = _layer_norm(x + attn, g1, b1)                 # residual + LN (fused)
    z = _conv1d_same(y, wd, bd, circular=False)       # downsample conv d->d/2
    z = jnp.maximum(z, 0.0)                           # ReLU (fused)
    return _layer_norm(z, g2, b2)


# -----------------------------------------------------------------------------
# The fused forward kernel: embedding + both encoder layers, one batch element
# per grid step.
# -----------------------------------------------------------------------------
def _fused_forward_kernel(
        x_ref, pos_ref, emb_w_ref,
        wqkv0_ref, bqkv0_ref, wo0_ref, bo0_ref, g10_ref, b10_ref,
        wd0_ref, bd0_ref, g20_ref, b20_ref,
        wqkv1_ref, bqkv1_ref, wo1_ref, bo1_ref, g11_ref, b11_ref,
        wd1_ref, bd1_ref, g21_ref, b21_ref,
        out_ref, *, num_heads):
    # DataEmbedding: circular token conv (k=3, no bias) + positional embedding.
    h = _conv1d_same(x_ref[0], emb_w_ref[...], None, circular=True)
    h = h + pos_ref[...]

    # Encoder layer 0: d_model -> d_model // 2
    h = _encoder_layer(h, wqkv0_ref[...], bqkv0_ref[0], wo0_ref[...],
                       bo0_ref[0], g10_ref[0], b10_ref[0], wd0_ref[...],
                       bd0_ref[0], g20_ref[0], b20_ref[0], num_heads)
    # Encoder layer 1: d_model // 2 -> d_model // 4
    h = _encoder_layer(h, wqkv1_ref[...], bqkv1_ref[0], wo1_ref[...],
                       bo1_ref[0], g11_ref[0], b11_ref[0], wd1_ref[...],
                       bd1_ref[0], g21_ref[0], b21_ref[0], num_heads)

    out_ref[0] = h.astype(out_ref.dtype)


# -----------------------------------------------------------------------------
# Wrapper
# -----------------------------------------------------------------------------
def _const_spec(a):
    nd = a.ndim
    return pl.BlockSpec(a.shape, lambda i, _nd=nd: (0,) * _nd)


def _layer_arg_list(lp):
    return [lp["wqkv"], lp["bqkv"], lp["wo"], lp["bo"],
            lp["ln1_g"], lp["ln1_b"], lp["wd"], lp["bd"],
            lp["ln2_g"], lp["ln2_b"]]


def cnn_adformer2_forward(params, x, num_heads, kernel_size, padding):
    """x: [B, win_size, feature_num] -> logits [B, num_classes]."""
    assert kernel_size == 2 * padding + 1, (
        "in-kernel padding assumes 'same' convs (kernel_size == 2*padding+1)")
    B, L, F = x.shape
    D = params["emb_w"].shape[-1]
    x = x.astype(jnp.float32)

    args = ([x, params["pos"], params["emb_w"]]
            + _layer_arg_list(params["layer0"])
            + _layer_arg_list(params["layer1"]))
    in_specs = ([pl.BlockSpec((1, L, F), lambda i: (i, 0, 0))]
                + [_const_spec(a) for a in args[1:]])

    enc = pl.pallas_call(
        functools.partial(_fused_forward_kernel, num_heads=num_heads),
        out_shape=jax.ShapeDtypeStruct((B, L, D // 4), jnp.float32),
        grid=(B,),
        in_specs=in_specs,
        out_specs=pl.BlockSpec((1, L, D // 4), lambda i: (i, 0, 0)),
        compiler_params=pltpu.CompilerParams(
            dimension_semantics=("parallel",),      # v7x: one batch elem per TC
            vmem_limit_bytes=32 * 1024 * 1024),     # safe on v5e/v6e/v7x
    )(*args)

    # Flatten + linear head: (B, L*D/4) @ (L*D/4, num_classes) is a single tiny
    # MXU pass — keep it as a plain XLA dot (a pallas_call there is pure launch
    # overhead and a num_classes/128 masked lane store).
    flat = enc.reshape(B, -1)
    return jnp.dot(flat, params["head_w"]) + params["head_b"]


# -----------------------------------------------------------------------------
# Parameter init (fresh init; see layout notes at top for torch weight porting)
# -----------------------------------------------------------------------------
def sinusoidal_pos_embedding(win_size, d_model):
    pos = jnp.arange(win_size, dtype=jnp.float32)[:, None]
    i = jnp.arange(0, d_model, 2, dtype=jnp.float32)[None, :]
    div = jnp.exp(-i * (math.log(10000.0) / d_model))
    pe = jnp.zeros((win_size, d_model), jnp.float32)
    pe = pe.at[:, 0::2].set(jnp.sin(pos * div))
    pe = pe.at[:, 1::2].set(jnp.cos(pos * div))
    return pe


def init_params(key, feature_num, d_model, num_heads, num_classes,
                win_size, kernel_size):
    assert d_model % 4 == 0 and (d_model // 2) % num_heads == 0
    ks = iter(jax.random.split(key, 16))
    s = 0.02

    def nrm(shape):
        w = s * jax.random.normal(next(ks), shape, jnp.float32)
        return w.astype(_MATMUL_DTYPE)   # matmul weights stored bf16

    def layer_params(d_in):
        d_out = d_in // 2
        return {
            "wqkv": nrm((kernel_size, d_in, 3 * d_in)),   # fused Q|K|V conv
            "bqkv": jnp.zeros((1, 3 * d_in), jnp.float32),
            "wo": nrm((d_in, d_in)),                      # 1x1 conv == matmul
            "bo": jnp.zeros((1, d_in), jnp.float32),
            "ln1_g": jnp.ones((1, d_in), jnp.float32),
            "ln1_b": jnp.zeros((1, d_in), jnp.float32),
            "wd": nrm((kernel_size, d_in, d_out)),        # downsample conv
            "bd": jnp.zeros((1, d_out), jnp.float32),
            "ln2_g": jnp.ones((1, d_out), jnp.float32),
            "ln2_b": jnp.zeros((1, d_out), jnp.float32),
        }

    return {
        "emb_w": nrm((3, feature_num, d_model)),          # circular token conv
        "pos": sinusoidal_pos_embedding(win_size, d_model),
        "layer0": layer_params(d_model),
        "layer1": layer_params(d_model // 2),
        "head_w": s * jax.random.normal(
            next(ks), (d_model // 4 * win_size, num_classes), jnp.float32),
        "head_b": jnp.zeros((num_classes,), jnp.float32),
    }


# -----------------------------------------------------------------------------
if __name__ == "__main__":
    B = 2
    win_size = 16
    feature_num = 4
    d_model = 32
    num_heads = 4
    num_classes = 2
    kernel_size = 3
    padding = 1

    key = jax.random.PRNGKey(0)
    pkey, xkey = jax.random.split(key)
    params = init_params(pkey, feature_num, d_model, num_heads,
                         num_classes, win_size, kernel_size)
    x = jax.random.normal(xkey, (B, win_size, feature_num), jnp.float32)

    fwd = jax.jit(functools.partial(
        cnn_adformer2_forward, num_heads=num_heads,
        kernel_size=kernel_size, padding=padding))
    out = fwd(params, x)
    jax.block_until_ready(out)
    assert out.shape == (B, num_classes), out.shape
    print("KERNEL_OK")
</pallas_src>

<mosaic_0001>
module attributes {stable_mosaic.version = 11 : i64} {
  func.func @_fused_forward_kernel(%arg0: i32, %arg1: memref<1x16x4xf32, #tpu.memory_space<vmem>>, %arg2: memref<16x32xf32, #tpu.memory_space<vmem>>, %arg3: memref<3x4x32xbf16, #tpu.memory_space<vmem>>, %arg4: memref<3x32x96xbf16, #tpu.memory_space<vmem>>, %arg5: memref<1x96xf32, #tpu.memory_space<vmem>>, %arg6: memref<32x32xbf16, #tpu.memory_space<vmem>>, %arg7: memref<1x32xf32, #tpu.memory_space<vmem>>, %arg8: memref<1x32xf32, #tpu.memory_space<vmem>>, %arg9: memref<1x32xf32, #tpu.memory_space<vmem>>, %arg10: memref<3x32x16xbf16, #tpu.memory_space<vmem>>, %arg11: memref<1x16xf32, #tpu.memory_space<vmem>>, %arg12: memref<1x16xf32, #tpu.memory_space<vmem>>, %arg13: memref<1x16xf32, #tpu.memory_space<vmem>>, %arg14: memref<3x16x48xbf16, #tpu.memory_space<vmem>>, %arg15: memref<1x48xf32, #tpu.memory_space<vmem>>, %arg16: memref<16x16xbf16, #tpu.memory_space<vmem>>, %arg17: memref<1x16xf32, #tpu.memory_space<vmem>>, %arg18: memref<1x16xf32, #tpu.memory_space<vmem>>, %arg19: memref<1x16xf32, #tpu.memory_space<vmem>>, %arg20: memref<3x16x8xbf16, #tpu.memory_space<vmem>>, %arg21: memref<1x8xf32, #tpu.memory_space<vmem>>, %arg22: memref<1x8xf32, #tpu.memory_space<vmem>>, %arg23: memref<1x8xf32, #tpu.memory_space<vmem>>, %arg24: memref<1x16x8xf32, #tpu.memory_space<vmem>>) attributes {dimension_semantics = [#tpu.dimension_semantics<parallel>], iteration_bounds = array<i64: 2>, scalar_prefetch = 0 : i64, scratch_operands = 0 : i64, tpu.core_type = #tpu.core_type<tc>, window_params = [{transform_indices = @transform_0, window_bounds = array<i64: 1, 16, 4>}, {pipeline_mode = #tpu.pipeline_mode<synchronous>, transform_indices = @transform_1, window_bounds = array<i64: 16, 32>}, {pipeline_mode = #tpu.pipeline_mode<synchronous>, transform_indices = @transform_2, window_bounds = array<i64: 3, 4, 32>}, {pipeline_mode = #tpu.pipeline_mode<synchronous>, transform_indices = @transform_3, window_bounds = array<i64: 3, 32, 96>}, {pipeline_mode = #tpu.pipeline_mode<synchronous>, transform_indices = @transform_4, window_bounds = array<i64: 1, 96>}, {pipeline_mode = #tpu.pipeline_mode<synchronous>, transform_indices = @transform_5, window_bounds = array<i64: 32, 32>}, {pipeline_mode = #tpu.pipeline_mode<synchronous>, transform_indices = @transform_6, window_bounds = array<i64: 1, 32>}, {pipeline_mode = #tpu.pipeline_mode<synchronous>, transform_indices = @transform_7, window_bounds = array<i64: 1, 32>}, {pipeline_mode = #tpu.pipeline_mode<synchronous>, transform_indices = @transform_8, window_bounds = array<i64: 1, 32>}, {pipeline_mode = #tpu.pipeline_mode<synchronous>, transform_indices = @transform_9, window_bounds = array<i64: 3, 32, 16>}, {pipeline_mode = #tpu.pipeline_mode<synchronous>, transform_indices = @transform_10, window_bounds = array<i64: 1, 16>}, {pipeline_mode = #tpu.pipeline_mode<synchronous>, transform_indices = @transform_11, window_bounds = array<i64: 1, 16>}, {pipeline_mode = #tpu.pipeline_mode<synchronous>, transform_indices = @transform_12, window_bounds = array<i64: 1, 16>}, {pipeline_mode = #tpu.pipeline_mode<synchronous>, transform_indices = @transform_13, window_bounds = array<i64: 3, 16, 48>}, {pipeline_mode = #tpu.pipeline_mode<synchronous>, transform_indices = @transform_14, window_bounds = array<i64: 1, 48>}, {pipeline_mode = #tpu.pipeline_mode<synchronous>, transform_indices = @transform_15, window_bounds = array<i64: 16, 16>}, {pipeline_mode = #tpu.pipeline_mode<synchronous>, transform_indices = @transform_16, window_bounds = array<i64: 1, 16>}, {pipeline_mode = #tpu.pipeline_mode<synchronous>, transform_indices = @transform_17, window_bounds = array<i64: 1, 16>}, {pipeline_mode = #tpu.pipeline_mode<synchronous>, transform_indices = @transform_18, window_bounds = array<i64: 1, 16>}, {pipeline_mode = #tpu.pipeline_mode<synchronous>, transform_indices = @transform_19, window_bounds = array<i64: 3, 16, 8>}, {pipeline_mode = #tpu.pipeline_mode<synchronous>, transform_indices = @transform_20, window_bounds = array<i64: 1, 8>}, {pipeline_mode = #tpu.pipeline_mode<synchronous>, transform_indices = @transform_21, window_bounds = array<i64: 1, 8>}, {pipeline_mode = #tpu.pipeline_mode<synchronous>, transform_indices = @transform_22, window_bounds = array<i64: 1, 8>}, {transform_indices = @transform_23, window_bounds = array<i64: 1, 16, 8>}]} {
    %c0 = arith.constant 0 : index
    %c0_0 = arith.constant 0 : index
    %c0_1 = arith.constant 0 : index
    %0 = vector.load %arg1[%c0, %c0_0, %c0_1] : memref<1x16x4xf32, #tpu.memory_space<vmem>>, vector<1x16x4xf32>
    %1 = vector.shape_cast %0 : vector<1x16x4xf32> to vector<16x4xf32>
    %c0_2 = arith.constant 0 : index
    %c0_3 = arith.constant 0 : index
    %c0_4 = arith.constant 0 : index
    %2 = vector.load %arg3[%c0_2, %c0_3, %c0_4] : memref<3x4x32xbf16, #tpu.memory_space<vmem>>, vector<3x4x32xbf16>
    %3 = vector.extract_strided_slice %1 {offsets = [15, 0], sizes = [1, 4], strides = [1, 1]} : vector<16x4xf32> to vector<1x4xf32>
    %4 = vector.extract_strided_slice %1 {offsets = [0, 0], sizes = [1, 4], strides = [1, 1]} : vector<16x4xf32> to vector<1x4xf32>
    %5 = tpu.concatenate %3, %1, %4 in 0 : vector<1x4xf32>, vector<16x4xf32>, vector<1x4xf32> -> vector<18x4xf32>
    %6 = arith.truncf %5 : vector<18x4xf32> to vector<18x4xbf16>
    %cst = arith.constant 0.000000e+00 : f32
    %7 = vector.broadcast %cst : f32 to vector<16x32xf32>
    %8 = vector.extract_strided_slice %6 {offsets = [0, 0], sizes = [16, 4], strides = [1, 1]} : vector<18x4xbf16> to vector<16x4xbf16>
    %9 = vector.extract_strided_slice %2 {offsets = [0, 0, 0], sizes = [1, 4, 32], strides = [1, 1, 1]} : vector<3x4x32xbf16> to vector<1x4x32xbf16>
    %10 = vector.shape_cast %9 : vector<1x4x32xbf16> to vector<4x32xbf16>
    %cst_5 = arith.constant dense<0.000000e+00> : vector<16x32xf32>
    %11 = tpu.matmul %8, %10, %cst_5 {dimension_numbers = #tpu.dot_dimension_numbers<[1], [0], [0], [1], [0, 0, 1, 1], [], []>} : vector<16x4xbf16>, vector<4x32xbf16>, vector<16x32xf32> -> vector<16x32xf32>
    %12 = arith.addf %7, %11 : vector<16x32xf32>
    %13 = vector.extract_strided_slice %6 {offsets = [1, 0], sizes = [16, 4], strides = [1, 1]} : vector<18x4xbf16> to vector<16x4xbf16>
    %14 = vector.extract_strided_slice %2 {offsets = [1, 0, 0], sizes = [1, 4, 32], strides = [1, 1, 1]} : vector<3x4x32xbf16> to vector<1x4x32xbf16>
    %15 = vector.shape_cast %14 : vector<1x4x32xbf16> to vector<4x32xbf16>
    %cst_6 = arith.constant dense<0.000000e+00> : vector<16x32xf32>
    %16 = tpu.matmul %13, %15, %cst_6 {dimension_numbers = #tpu.dot_dimension_numbers<[1], [0], [0], [1], [0, 0, 1, 1], [], []>} : vector<16x4xbf16>, vector<4x32xbf16>, vector<16x32xf32> -> vector<16x32xf32>
    %17 = arith.addf %12, %16 : vector<16x32xf32>
    %18 = vector.extract_strided_slice %6 {offsets = [2, 0], sizes = [16, 4], strides = [1, 1]} : vector<18x4xbf16> to vector<16x4xbf16>
    %19 = vector.extract_strided_slice %2 {offsets = [2, 0, 0], sizes = [1, 4, 32], strides = [1, 1, 1]} : vector<3x4x32xbf16> to vector<1x4x32xbf16>
    %20 = vector.shape_cast %19 : vector<1x4x32xbf16> to vector<4x32xbf16>
    %cst_7 = arith.constant dense<0.000000e+00> : vector<16x32xf32>
    %21 = tpu.matmul %18, %20, %cst_7 {dimension_numbers = #tpu.dot_dimension_numbers<[1], [0], [0], [1], [0, 0, 1, 1], [], []>} : vector<16x4xbf16>, vector<4x32xbf16>, vector<16x32xf32> -> vector<16x32xf32>
    %22 = arith.addf %17, %21 : vector<16x32xf32>
    %c0_8 = arith.constant 0 : index
    %c0_9 = arith.constant 0 : index
    %23 = vector.load %arg2[%c0_8, %c0_9] : memref<16x32xf32, #tpu.memory_space<vmem>>, vector<16x32xf32>
    %24 = arith.addf %22, %23 : vector<16x32xf32>
    %c0_10 = arith.constant 0 : index
    %c0_11 = arith.constant 0 : index
    %c0_12 = arith.constant 0 : index
    %25 = vector.load %arg4[%c0_10, %c0_11, %c0_12] : memref<3x32x96xbf16, #tpu.memory_space<vmem>>, vector<3x32x96xbf16>
    %c0_13 = arith.constant 0 : index
    %c0_14 = arith.constant 0 : index
    %26 = vector.load %arg5[%c0_13, %c0_14] : memref<1x96xf32, #tpu.memory_space<vmem>>, vector<1x96xf32>
    %27 = vector.shape_cast %26 : vector<1x96xf32> to vector<96xf32>
    %c0_15 = arith.constant 0 : index
    %c0_16 = arith.constant 0 : index
    %28 = vector.load %arg6[%c0_15, %c0_16] : memref<32x32xbf16, #tpu.memory_space<vmem>>, vector<32x32xbf16>
    %c0_17 = arith.constant 0 : index
    %c0_18 = arith.constant 0 : index
    %29 = vector.load %arg7[%c0_17, %c0_18] : memref<1x32xf32, #tpu.memory_space<vmem>>, vector<1x32xf32>
    %30 = vector.shape_cast %29 : vector<1x32xf32> to vector<32xf32>
    %c0_19 = arith.constant 0 : index
    %c0_20 = arith.constant 0 : index
    %31 = vector.load %arg8[%c0_19, %c0_20] : memref<1x32xf32, #tpu.memory_space<vmem>>, vector<1x32xf32>
    %32 = vector.shape_cast %31 : vector<1x32xf32> to vector<32xf32>
    %c0_21 = arith.constant 0 : index
    %c0_22 = arith.constant 0 : index
    %33 = vector.load %arg9[%c0_21, %c0_22] : memref<1x32xf32, #tpu.memory_space<vmem>>, vector<1x32xf32>
    %34 = vector.shape_cast %33 : vector<1x32xf32> to vector<32xf32>
    %c0_23 = arith.constant 0 : index
    %c0_24 = arith.constant 0 : index
    %c0_25 = arith.constant 0 : index
    %35 = vector.load %arg10[%c0_23, %c0_24, %c0_25] : memref<3x32x16xbf16, #tpu.memory_space<vmem>>, vector<3x32x16xbf16>
    %c0_26 = arith.constant 0 : index
    %c0_27 = arith.constant 0 : index
    %36 = vector.load %arg11[%c0_26, %c0_27] : memref<1x16xf32, #tpu.memory_space<vmem>>, vector<1x16xf32>
    %37 = vector.shape_cast %36 : vector<1x16xf32> to vector<16xf32>
    %c0_28 = arith.constant 0 : index
    %c0_29 = arith.constant 0 : index
    %38 = vector.load %arg12[%c0_28, %c0_29] : memref<1x16xf32, #tpu.memory_space<vmem>>, vector<1x16xf32>
    %39 = vector.shape_cast %38 : vector<1x16xf32> to vector<16xf32>
    %c0_30 = arith.constant 0 : index
    %c0_31 = arith.constant 0 : index
    %40 = vector.load %arg13[%c0_30, %c0_31] : memref<1x16xf32, #tpu.memory_space<vmem>>, vector<1x16xf32>
    %41 = vector.shape_cast %40 : vector<1x16xf32> to vector<16xf32>
    %cst_32 = arith.constant 0.000000e+00 : f32
    %42 = vector.broadcast %cst_32 : f32 to vector<1x32xf32>
    %43 = tpu.concatenate %42, %24, %42 in 0 : vector<1x32xf32>, vector<16x32xf32>, vector<1x32xf32> -> vector<18x32xf32>
    %44 = arith.truncf %43 : vector<18x32xf32> to vector<18x32xbf16>
    %45 = vector.shape_cast %27 : vector<96xf32> to vector<1x96xf32>
    %46 = vector.shape_cast %45 : vector<1x96xf32> to vector<1x96xf32>
    %47 = vector.broadcast %46 : vector<1x96xf32> to vector<16x96xf32>
    %48 = vector.extract_strided_slice %44 {offsets = [0, 0], sizes = [16, 32], strides = [1, 1]} : vector<18x32xbf16> to vector<16x32xbf16>
    %49 = vector.extract_strided_slice %25 {offsets = [0, 0, 0], sizes = [1, 32, 96], strides = [1, 1, 1]} : vector<3x32x96xbf16> to vector<1x32x96xbf16>
    %50 = vector.shape_cast %49 : vector<1x32x96xbf16> to vector<32x96xbf16>
    %cst_33 = arith.constant dense<0.000000e+00> : vector<16x96xf32>
    %51 = tpu.matmul %48, %50, %cst_33 {dimension_numbers = #tpu.dot_dimension_numbers<[1], [0], [0], [1], [0, 0, 1, 1], [], []>} : vector<16x32xbf16>, vector<32x96xbf16>, vector<16x96xf32> -> vector<16x96xf32>
    %52 = arith.addf %47, %51 : vector<16x96xf32>
    %53 = vector.extract_strided_slice %44 {offsets = [1, 0], sizes = [16, 32], strides = [1, 1]} : vector<18x32xbf16> to vector<16x32xbf16>
    %54 = vector.extract_strided_slice %25 {offsets = [1, 0, 0], sizes = [1, 32, 96], strides = [1, 1, 1]} : vector<3x32x96xbf16> to vector<1x32x96xbf16>
    %55 = vector.shape_cast %54 : vector<1x32x96xbf16> to vector<32x96xbf16>
    %cst_34 = arith.constant dense<0.000000e+00> : vector<16x96xf32>
    %56 = tpu.matmul %53, %55, %cst_34 {dimension_numbers = #tpu.dot_dimension_numbers<[1], [0], [0], [1], [0, 0, 1, 1], [], []>} : vector<16x32xbf16>, vector<32x96xbf16>, vector<16x96xf32> -> vector<16x96xf32>
    %57 = arith.addf %52, %56 : vector<16x96xf32>
    %58 = vector.extract_strided_slice %44 {offsets = [2, 0], sizes = [16, 32], strides = [1, 1]} : vector<18x32xbf16> to vector<16x32xbf16>
    %59 = vector.extract_strided_slice %25 {offsets = [2, 0, 0], sizes = [1, 32, 96], strides = [1, 1, 1]} : vector<3x32x96xbf16> to vector<1x32x96xbf16>
    %60 = vector.shape_cast %59 : vector<1x32x96xbf16> to vector<32x96xbf16>
    %cst_35 = arith.constant dense<0.000000e+00> : vector<16x96xf32>
    %61 = tpu.matmul %58, %60, %cst_35 {dimension_numbers = #tpu.dot_dimension_numbers<[1], [0], [0], [1], [0, 0, 1, 1], [], []>} : vector<16x32xbf16>, vector<32x96xbf16>, vector<16x96xf32> -> vector<16x96xf32>
    %62 = arith.addf %57, %61 : vector<16x96xf32>
    %63 = vector.extract_strided_slice %62 {offsets = [0, 0], sizes = [16, 32], strides = [1, 1]} : vector<16x96xf32> to vector<16x32xf32>
    %64 = vector.extract_strided_slice %62 {offsets = [0, 32], sizes = [16, 32], strides = [1, 1]} : vector<16x96xf32> to vector<16x32xf32>
    %65 = vector.extract_strided_slice %62 {offsets = [0, 64], sizes = [16, 32], strides = [1, 1]} : vector<16x96xf32> to vector<16x32xf32>
    %cst_36 = arith.constant 0.353553385 : f32
    %66 = vector.broadcast %cst_36 : f32 to vector<16x32xf32>
    %67 = arith.mulf %63, %66 : vector<16x32xf32>
    %68 = arith.truncf %67 : vector<16x32xf32> to vector<16x32xbf16>
    %69 = arith.truncf %64 : vector<16x32xf32> to vector<16x32xbf16>
    %70 = arith.truncf %65 : vector<16x32xf32> to vector<16x32xbf16>
    %cst_37 = arith.constant 0.000000e+00 : f32
    %71 = vector.broadcast %cst_37 : f32 to vector<16x32xf32>
    %72 = vector.extract_strided_slice %68 {offsets = [0, 0], sizes = [16, 8], strides = [1, 1]} : vector<16x32xbf16> to vector<16x8xbf16>
    %73 = vector.extract_strided_slice %69 {offsets = [0, 0], sizes = [16, 8], strides = [1, 1]} : vector<16x32xbf16> to vector<16x8xbf16>
    %cst_38 = arith.constant dense<0.000000e+00> : vector<16x16xf32>
    %74 = tpu.matmul %72, %73, %cst_38 {dimension_numbers = #tpu.dot_dimension_numbers<[1], [1], [0], [0], [0, 0, 1, 0], [], []>} : vector<16x8xbf16>, vector<16x8xbf16>, vector<16x16xf32> -> vector<16x16xf32>
    %cst_39 = arith.constant dense<0xFF800000> : vector<16xf32>
    %75 = vector.multi_reduction <maximumf>, %74, %cst_39 [1] : vector<16x16xf32> to vector<16xf32>
    %76 = vector.shape_cast %75 : vector<16xf32> to vector<16x1xf32>
    %77 = vector.broadcast %76 : vector<16x1xf32> to vector<16x16xf32>
    %78 = arith.subf %74, %77 : vector<16x16xf32>
    %79 = math.exp %78 : vector<16x16xf32>
    %cst_40 = arith.constant dense<0.000000e+00> : vector<16xf32>
    %80 = vector.multi_reduction <add>, %79, %cst_40 [1] : vector<16x16xf32> to vector<16xf32>
    %81 = vector.shape_cast %80 : vector<16xf32> to vector<16x1xf32>
    %82 = tpu.reciprocal %81 {approx = true} : vector<16x1xf32> -> vector<16x1xf32>
    %83 = vector.broadcast %82 : vector<16x1xf32> to vector<16x16xf32>
    %84 = arith.mulf %79, %83 : vector<16x16xf32>
    %85 = arith.truncf %84 : vector<16x16xf32> to vector<16x16xbf16>
    %86 = vector.extract_strided_slice %70 {offsets = [0, 0], sizes = [16, 8], strides = [1, 1]} : vector<16x32xbf16> to vector<16x8xbf16>
    %cst_41 = arith.constant dense<0.000000e+00> : vector<16x8xf32>
    %87 = tpu.matmul %85, %86, %cst_41 {dimension_numbers = #tpu.dot_dimension_numbers<[1], [0], [0], [1], [0, 0, 1, 1], [], []>} : vector<16x16xbf16>, vector<16x8xbf16>, vector<16x8xf32> -> vector<16x8xf32>
    %88 = arith.truncf %87 : vector<16x8xf32> to vector<16x8xbf16>
    %89 = vector.extract_strided_slice %28 {offsets = [0, 0], sizes = [8, 32], strides = [1, 1]} : vector<32x32xbf16> to vector<8x32xbf16>
    %cst_42 = arith.constant dense<0.000000e+00> : vector<16x32xf32>
    %90 = tpu.matmul %88, %89, %cst_42 {dimension_numbers = #tpu.dot_dimension_numbers<[1], [0], [0], [1], [0, 0, 1, 1], [], []>} : vector<16x8xbf16>, vector<8x32xbf16>, vector<16x32xf32> -> vector<16x32xf32>
    %91 = arith.addf %71, %90 : vector<16x32xf32>
    %92 = vector.extract_strided_slice %68 {offsets = [0, 8], sizes = [16, 8], strides = [1, 1]} : vector<16x32xbf16> to vector<16x8xbf16>
    %93 = vector.extract_strided_slice %69 {offsets = [0, 8], sizes = [16, 8], strides = [1, 1]} : vector<16x32xbf16> to vector<16x8xbf16>
    %cst_43 = arith.constant dense<0.000000e+00> : vector<16x16xf32>
    %94 = tpu.matmul %92, %93, %cst_43 {dimension_numbers = #tpu.dot_dimension_numbers<[1], [1], [0], [0], [0, 0, 1, 0], [], []>} : vector<16x8xbf16>, vector<16x8xbf16>, vector<16x16xf32> -> vector<16x16xf32>
    %cst_44 = arith.constant dense<0xFF800000> : vector<16xf32>
    %95 = vector.multi_reduction <maximumf>, %94, %cst_44 [1] : vector<16x16xf32> to vector<16xf32>
    %96 = vector.shape_cast %95 : vector<16xf32> to vector<16x1xf32>
    %97 = vector.broadcast %96 : vector<16x1xf32> to vector<16x16xf32>
    %98 = arith.subf %94, %97 : vector<16x16xf32>
    %99 = math.exp %98 : vector<16x16xf32>
    %cst_45 = arith.constant dense<0.000000e+00> : vector<16xf32>
    %100 = vector.multi_reduction <add>, %99, %cst_45 [1] : vector<16x16xf32> to vector<16xf32>
    %101 = vector.shape_cast %100 : vector<16xf32> to vector<16x1xf32>
    %102 = tpu.reciprocal %101 {approx = true} : vector<16x1xf32> -> vector<16x1xf32>
    %103 = vector.broadcast %102 : vector<16x1xf32> to vector<16x16xf32>
    %104 = arith.mulf %99, %103 : vector<16x16xf32>
    %105 = arith.truncf %104 : vector<16x16xf32> to vector<16x16xbf16>
    %106 = vector.extract_strided_slice %70 {offsets = [0, 8], sizes = [16, 8], strides = [1, 1]} : vector<16x32xbf16> to vector<16x8xbf16>
    %cst_46 = arith.constant dense<0.000000e+00> : vector<16x8xf32>
    %107 = tpu.matmul %105, %106, %cst_46 {dimension_numbers = #tpu.dot_dimension_numbers<[1], [0], [0], [1], [0, 0, 1, 1], [], []>} : vector<16x16xbf16>, vector<16x8xbf16>, vector<16x8xf32> -> vector<16x8xf32>
    %108 = arith.truncf %107 : vector<16x8xf32> to vector<16x8xbf16>
    %109 = vector.extract_strided_slice %28 {offsets = [8, 0], sizes = [8, 32], strides = [1, 1]} : vector<32x32xbf16> to vector<8x32xbf16>
    %cst_47 = arith.constant dense<0.000000e+00> : vector<16x32xf32>
    %110 = tpu.matmul %108, %109, %cst_47 {dimension_numbers = #tpu.dot_dimension_numbers<[1], [0], [0], [1], [0, 0, 1, 1], [], []>} : vector<16x8xbf16>, vector<8x32xbf16>, vector<16x32xf32> -> vector<16x32xf32>
    %111 = arith.addf %91, %110 : vector<16x32xf32>
    %112 = vector.extract_strided_slice %68 {offsets = [0, 16], sizes = [16, 8], strides = [1, 1]} : vector<16x32xbf16> to vector<16x8xbf16>
    %113 = vector.extract_strided_slice %69 {offsets = [0, 16], sizes = [16, 8], strides = [1, 1]} : vector<16x32xbf16> to vector<16x8xbf16>
    %cst_48 = arith.constant dense<0.000000e+00> : vector<16x16xf32>
    %114 = tpu.matmul %112, %113, %cst_48 {dimension_numbers = #tpu.dot_dimension_numbers<[1], [1], [0], [0], [0, 0, 1, 0], [], []>} : vector<16x8xbf16>, vector<16x8xbf16>, vector<16x16xf32> -> vector<16x16xf32>
    %cst_49 = arith.constant dense<0xFF800000> : vector<16xf32>
    %115 = vector.multi_reduction <maximumf>, %114, %cst_49 [1] : vector<16x16xf32> to vector<16xf32>
    %116 = vector.shape_cast %115 : vector<16xf32> to vector<16x1xf32>
    %117 = vector.broadcast %116 : vector<16x1xf32> to vector<16x16xf32>
    %118 = arith.subf %114, %117 : vector<16x16xf32>
    %119 = math.exp %118 : vector<16x16xf32>
    %cst_50 = arith.constant dense<0.000000e+00> : vector<16xf32>
    %120 = vector.multi_reduction <add>, %119, %cst_50 [1] : vector<16x16xf32> to vector<16xf32>
    %121 = vector.shape_cast %120 : vector<16xf32> to vector<16x1xf32>
    %122 = tpu.reciprocal %121 {approx = true} : vector<16x1xf32> -> vector<16x1xf32>
    %123 = vector.broadcast %122 : vector<16x1xf32> to vector<16x16xf32>
    %124 = arith.mulf %119, %123 : vector<16x16xf32>
    %125 = arith.truncf %124 : vector<16x16xf32> to vector<16x16xbf16>
    %126 = vector.extract_strided_slice %70 {offsets = [0, 16], sizes = [16, 8], strides = [1, 1]} : vector<16x32xbf16> to vector<16x8xbf16>
    %cst_51 = arith.constant dense<0.000000e+00> : vector<16x8xf32>
    %127 = tpu.matmul %125, %126, %cst_51 {dimension_numbers = #tpu.dot_dimension_numbers<[1], [0], [0], [1], [0, 0, 1, 1], [], []>} : vector<16x16xbf16>, vector<16x8xbf16>, vector<16x8xf32> -> vector<16x8xf32>
    %128 = arith.truncf %127 : vector<16x8xf32> to vector<16x8xbf16>
    %129 = vector.extract_strided_slice %28 {offsets = [16, 0], sizes = [8, 32], strides = [1, 1]} : vector<32x32xbf16> to vector<8x32xbf16>
    %cst_52 = arith.constant dense<0.000000e+00> : vector<16x32xf32>
    %130 = tpu.matmul %128, %129, %cst_52 {dimension_numbers = #tpu.dot_dimension_numbers<[1], [0], [0], [1], [0, 0, 1, 1], [], []>} : vector<16x8xbf16>, vector<8x32xbf16>, vector<16x32xf32> -> vector<16x32xf32>
    %131 = arith.addf %111, %130 : vector<16x32xf32>
    %132 = vector.extract_strided_slice %68 {offsets = [0, 24], sizes = [16, 8], strides = [1, 1]} : vector<16x32xbf16> to vector<16x8xbf16>
    %133 = vector.extract_strided_slice %69 {offsets = [0, 24], sizes = [16, 8], strides = [1, 1]} : vector<16x32xbf16> to vector<16x8xbf16>
    %cst_53 = arith.constant dense<0.000000e+00> : vector<16x16xf32>
    %134 = tpu.matmul %132, %133, %cst_53 {dimension_numbers = #tpu.dot_dimension_numbers<[1], [1], [0], [0], [0, 0, 1, 0], [], []>} : vector<16x8xbf16>, vector<16x8xbf16>, vector<16x16xf32> -> vector<16x16xf32>
    %cst_54 = arith.constant dense<0xFF800000> : vector<16xf32>
    %135 = vector.multi_reduction <maximumf>, %134, %cst_54 [1] : vector<16x16xf32> to vector<16xf32>
    %136 = vector.shape_cast %135 : vector<16xf32> to vector<16x1xf32>
    %137 = vector.broadcast %136 : vector<16x1xf32> to vector<16x16xf32>
    %138 = arith.subf %134, %137 : vector<16x16xf32>
    %139 = math.exp %138 : vector<16x16xf32>
    %cst_55 = arith.constant dense<0.000000e+00> : vector<16xf32>
    %140 = vector.multi_reduction <add>, %139, %cst_55 [1] : vector<16x16xf32> to vector<16xf32>
    %141 = vector.shape_cast %140 : vector<16xf32> to vector<16x1xf32>
    %142 = tpu.reciprocal %141 {approx = true} : vector<16x1xf32> -> vector<16x1xf32>
    %143 = vector.broadcast %142 : vector<16x1xf32> to vector<16x16xf32>
    %144 = arith.mulf %139, %143 : vector<16x16xf32>
    %145 = arith.truncf %144 : vector<16x16xf32> to vector<16x16xbf16>
    %146 = vector.extract_strided_slice %70 {offsets = [0, 24], sizes = [16, 8], strides = [1, 1]} : vector<16x32xbf16> to vector<16x8xbf16>
    %cst_56 = arith.constant dense<0.000000e+00> : vector<16x8xf32>
    %147 = tpu.matmul %145, %146, %cst_56 {dimension_numbers = #tpu.dot_dimension_numbers<[1], [0], [0], [1], [0, 0, 1, 1], [], []>} : vector<16x16xbf16>, vector<16x8xbf16>, vector<16x8xf32> -> vector<16x8xf32>
    %148 = arith.truncf %147 : vector<16x8xf32> to vector<16x8xbf16>
    %149 = vector.extract_strided_slice %28 {offsets = [24, 0], sizes = [8, 32], strides = [1, 1]} : vector<32x32xbf16> to vector<8x32xbf16>
    %cst_57 = arith.constant dense<0.000000e+00> : vector<16x32xf32>
    %150 = tpu.matmul %148, %149, %cst_57 {dimension_numbers = #tpu.dot_dimension_numbers<[1], [0], [0], [1], [0, 0, 1, 1], [], []>} : vector<16x8xbf16>, vector<8x32xbf16>, vector<16x32xf32> -> vector<16x32xf32>
    %151 = arith.addf %131, %150 : vector<16x32xf32>
    %152 = vector.shape_cast %30 : vector<32xf32> to vector<1x32xf32>
    %153 = vector.broadcast %152 : vector<1x32xf32> to vector<16x32xf32>
    %154 = arith.addf %151, %153 : vector<16x32xf32>
    %155 = arith.addf %24, %154 : vector<16x32xf32>
    %cst_58 = arith.constant dense<0.000000e+00> : vector<16xf32>
    %156 = vector.multi_reduction <add>, %155, %cst_58 [1] : vector<16x32xf32> to vector<16xf32>
    %157 = vector.shape_cast %156 : vector<16xf32> to vector<16x1xf32>
    %cst_59 = arith.constant 3.200000e+01 : f32
    %158 = vector.broadcast %cst_59 : f32 to vector<16x1xf32>
    %159 = arith.divf %157, %158 : vector<16x1xf32>
    %160 = vector.broadcast %159 : vector<16x1xf32> to vector<16x32xf32>
    %161 = arith.subf %155, %160 : vector<16x32xf32>
    %162 = arith.mulf %161, %161 : vector<16x32xf32>
    %cst_60 = arith.constant dense<0.000000e+00> : vector<16xf32>
    %163 = vector.multi_reduction <add>, %162, %cst_60 [1] : vector<16x32xf32> to vector<16xf32>
    %164 = vector.shape_cast %163 : vector<16xf32> to vector<16x1xf32>
    %cst_61 = arith.constant 3.200000e+01 : f32
    %165 = vector.broadcast %cst_61 : f32 to vector<16x1xf32>
    %166 = arith.divf %164, %165 : vector<16x1xf32>
    %167 = vector.broadcast %159 : vector<16x1xf32> to vector<16x32xf32>
    %168 = arith.subf %155, %167 : vector<16x32xf32>
    %cst_62 = arith.constant 9.99999974E-6 : f32
    %169 = vector.broadcast %cst_62 : f32 to vector<16x1xf32>
    %170 = arith.addf %166, %169 : vector<16x1xf32>
    %171 = math.rsqrt %170 : vector<16x1xf32>
    %172 = vector.broadcast %171 : vector<16x1xf32> to vector<16x32xf32>
    %173 = arith.mulf %168, %172 : vector<16x32xf32>
    %174 = vector.shape_cast %32 : vector<32xf32> to vector<1x32xf32>
    %175 = vector.broadcast %174 : vector<1x32xf32> to vector<16x32xf32>
    %176 = arith.mulf %173, %175 : vector<16x32xf32>
    %177 = vector.shape_cast %34 : vector<32xf32> to vector<1x32xf32>
    %178 = vector.broadcast %177 : vector<1x32xf32> to vector<16x32xf32>
    %179 = arith.addf %176, %178 : vector<16x32xf32>
    %cst_63 = arith.constant 0.000000e+00 : f32
    %180 = vector.broadcast %cst_63 : f32 to vector<1x32xf32>
    %181 = tpu.concatenate %180, %179, %180 in 0 : vector<1x32xf32>, vector<16x32xf32>, vector<1x32xf32> -> vector<18x32xf32>
    %182 = arith.truncf %181 : vector<18x32xf32> to vector<18x32xbf16>
    %183 = vector.shape_cast %37 : vector<16xf32> to vector<1x16xf32>
    %184 = vector.shape_cast %183 : vector<1x16xf32> to vector<1x16xf32>
    %185 = vector.broadcast %184 : vector<1x16xf32> to vector<16x16xf32>
    %186 = vector.extract_strided_slice %182 {offsets = [0, 0], sizes = [16, 32], strides = [1, 1]} : vector<18x32xbf16> to vector<16x32xbf16>
    %187 = vector.extract_strided_slice %35 {offsets = [0, 0, 0], sizes = [1, 32, 16], strides = [1, 1, 1]} : vector<3x32x16xbf16> to vector<1x32x16xbf16>
    %188 = vector.shape_cast %187 : vector<1x32x16xbf16> to vector<32x16xbf16>
    %cst_64 = arith.constant dense<0.000000e+00> : vector<16x16xf32>
    %189 = tpu.matmul %186, %188, %cst_64 {dimension_numbers = #tpu.dot_dimension_numbers<[1], [0], [0], [1], [0, 0, 1, 1], [], []>} : vector<16x32xbf16>, vector<32x16xbf16>, vector<16x16xf32> -> vector<16x16xf32>
    %190 = arith.addf %185, %189 : vector<16x16xf32>
    %191 = vector.extract_strided_slice %182 {offsets = [1, 0], sizes = [16, 32], strides = [1, 1]} : vector<18x32xbf16> to vector<16x32xbf16>
    %192 = vector.extract_strided_slice %35 {offsets = [1, 0, 0], sizes = [1, 32, 16], strides = [1, 1, 1]} : vector<3x32x16xbf16> to vector<1x32x16xbf16>
    %193 = vector.shape_cast %192 : vector<1x32x16xbf16> to vector<32x16xbf16>
    %cst_65 = arith.constant dense<0.000000e+00> : vector<16x16xf32>
    %194 = tpu.matmul %191, %193, %cst_65 {dimension_numbers = #tpu.dot_dimension_numbers<[1], [0], [0], [1], [0, 0, 1, 1], [], []>} : vector<16x32xbf16>, vector<32x16xbf16>, vector<16x16xf32> -> vector<16x16xf32>
    %195 = arith.addf %190, %194 : vector<16x16xf32>
    %196 = vector.extract_strided_slice %182 {offsets = [2, 0], sizes = [16, 32], strides = [1, 1]} : vector<18x32xbf16> to vector<16x32xbf16>
    %197 = vector.extract_strided_slice %35 {offsets = [2, 0, 0], sizes = [1, 32, 16], strides = [1, 1, 1]} : vector<3x32x16xbf16> to vector<1x32x16xbf16>
    %198 = vector.shape_cast %197 : vector<1x32x16xbf16> to vector<32x16xbf16>
    %cst_66 = arith.constant dense<0.000000e+00> : vector<16x16xf32>
    %199 = tpu.matmul %196, %198, %cst_66 {dimension_numbers = #tpu.dot_dimension_numbers<[1], [0], [0], [1], [0, 0, 1, 1], [], []>} : vector<16x32xbf16>, vector<32x16xbf16>, vector<16x16xf32> -> vector<16x16xf32>
    %200 = arith.addf %195, %199 : vector<16x16xf32>
    %cst_67 = arith.constant 0.000000e+00 : f32
    %201 = vector.broadcast %cst_67 : f32 to vector<16x16xf32>
    %202 = arith.maximumf %200, %201 : vector<16x16xf32>
    %cst_68 = arith.constant dense<0.000000e+00> : vector<16xf32>
    %203 = vector.multi_reduction <add>, %202, %cst_68 [1] : vector<16x16xf32> to vector<16xf32>
    %204 = vector.shape_cast %203 : vector<16xf32> to vector<16x1xf32>
    %cst_69 = arith.constant 1.600000e+01 : f32
    %205 = vector.broadcast %cst_69 : f32 to vector<16x1xf32>
    %206 = arith.divf %204, %205 : vector<16x1xf32>
    %207 = vector.broadcast %206 : vector<16x1xf32> to vector<16x16xf32>
    %208 = arith.subf %202, %207 : vector<16x16xf32>
    %209 = arith.mulf %208, %208 : vector<16x16xf32>
    %cst_70 = arith.constant dense<0.000000e+00> : vector<16xf32>
    %210 = vector.multi_reduction <add>, %209, %cst_70 [1] : vector<16x16xf32> to vector<16xf32>
    %211 = vector.shape_cast %210 : vector<16xf32> to vector<16x1xf32>
    %cst_71 = arith.constant 1.600000e+01 : f32
    %212 = vector.broadcast %cst_71 : f32 to vector<16x1xf32>
    %213 = arith.divf %211, %212 : vector<16x1xf32>
    %214 = vector.broadcast %206 : vector<16x1xf32> to vector<16x16xf32>
    %215 = arith.subf %202, %214 : vector<16x16xf32>
    %cst_72 = arith.constant 9.99999974E-6 : f32
    %216 = vector.broadcast %cst_72 : f32 to vector<16x1xf32>
    %217 = arith.addf %213, %216 : vector<16x1xf32>
    %218 = math.rsqrt %217 : vector<16x1xf32>
    %219 = vector.broadcast %218 : vector<16x1xf32> to vector<16x16xf32>
    %220 = arith.mulf %215, %219 : vector<16x16xf32>
    %221 = vector.shape_cast %39 : vector<16xf32> to vector<1x16xf32>
    %222 = vector.broadcast %221 : vector<1x16xf32> to vector<16x16xf32>
    %223 = arith.mulf %220, %222 : vector<16x16xf32>
    %224 = vector.shape_cast %41 : vector<16xf32> to vector<1x16xf32>
    %225 = vector.broadcast %224 : vector<1x16xf32> to vector<16x16xf32>
    %226 = arith.addf %223, %225 : vector<16x16xf32>
    %c0_73 = arith.constant 0 : index
    %c0_74 = arith.constant 0 : index
    %c0_75 = arith.constant 0 : index
    %227 = vector.load %arg14[%c0_73, %c0_74, %c0_75] : memref<3x16x48xbf16, #tpu.memory_space<vmem>>, vector<3x16x48xbf16>
    %c0_76 = arith.constant 0 : index
    %c0_77 = arith.constant 0 : index
    %228 = vector.load %arg15[%c0_76, %c0_77] : memref<1x48xf32, #tpu.memory_space<vmem>>, vector<1x48xf32>
    %229 = vector.shape_cast %228 : vector<1x48xf32> to vector<48xf32>
    %c0_78 = arith.constant 0 : index
    %c0_79 = arith.constant 0 : index
    %230 = vector.load %arg16[%c0_78, %c0_79] : memref<16x16xbf16, #tpu.memory_space<vmem>>, vector<16x16xbf16>
    %c0_80 = arith.constant 0 : index
    %c0_81 = arith.constant 0 : index
    %231 = vector.load %arg17[%c0_80, %c0_81] : memref<1x16xf32, #tpu.memory_space<vmem>>, vector<1x16xf32>
    %232 = vector.shape_cast %231 : vector<1x16xf32> to vector<16xf32>
    %c0_82 = arith.constant 0 : index
    %c0_83 = arith.constant 0 : index
    %233 = vector.load %arg18[%c0_82, %c0_83] : memref<1x16xf32, #tpu.memory_space<vmem>>, vector<1x16xf32>
    %234 = vector.shape_cast %233 : vector<1x16xf32> to vector<16xf32>
    %c0_84 = arith.constant 0 : index
    %c0_85 = arith.constant 0 : index
    %235 = vector.load %arg19[%c0_84, %c0_85] : memref<1x16xf32, #tpu.memory_space<vmem>>, vector<1x16xf32>
    %236 = vector.shape_cast %235 : vector<1x16xf32> to vector<16xf32>
    %c0_86 = arith.constant 0 : index
    %c0_87 = arith.constant 0 : index
    %c0_88 = arith.constant 0 : index
    %237 = vector.load %arg20[%c0_86, %c0_87, %c0_88] : memref<3x16x8xbf16, #tpu.memory_space<vmem>>, vector<3x16x8xbf16>
    %c0_89 = arith.constant 0 : index
    %c0_90 = arith.constant 0 : index
    %238 = vector.load %arg21[%c0_89, %c0_90] : memref<1x8xf32, #tpu.memory_space<vmem>>, vector<1x8xf32>
    %239 = vector.shape_cast %238 : vector<1x8xf32> to vector<8xf32>
    %c0_91 = arith.constant 0 : index
    %c0_92 = arith.constant 0 : index
    %240 = vector.load %arg22[%c0_91, %c0_92] : memref<1x8xf32, #tpu.memory_space<vmem>>, vector<1x8xf32>
    %241 = vector.shape_cast %240 : vector<1x8xf32> to vector<8xf32>
    %c0_93 = arith.constant 0 : index
    %c0_94 = arith.constant 0 : index
    %242 = vector.load %arg23[%c0_93, %c0_94] : memref<1x8xf32, #tpu.memory_space<vmem>>, vector<1x8xf32>
    %243 = vector.shape_cast %242 : vector<1x8xf32> to vector<8xf32>
    %cst_95 = arith.constant 0.000000e+00 : f32
    %244 = vector.broadcast %cst_95 : f32 to vector<1x16xf32>
    %245 = tpu.concatenate %244, %226, %244 in 0 : vector<1x16xf32>, vector<16x16xf32>, vector<1x16xf32> -> vector<18x16xf32>
    %246 = arith.truncf %245 : vector<18x16xf32> to vector<18x16xbf16>
    %247 = vector.shape_cast %229 : vector<48xf32> to vector<1x48xf32>
    %248 = vector.shape_cast %247 : vector<1x48xf32> to vector<1x48xf32>
    %249 = vector.broadcast %248 : vector<1x48xf32> to vector<16x48xf32>
    %250 = vector.extract_strided_slice %246 {offsets = [0, 0], sizes = [16, 16], strides = [1, 1]} : vector<18x16xbf16> to vector<16x16xbf16>
    %251 = vector.extract_strided_slice %227 {offsets = [0, 0, 0], sizes = [1, 16, 48], strides = [1, 1, 1]} : vector<3x16x48xbf16> to vector<1x16x48xbf16>
    %252 = vector.shape_cast %251 : vector<1x16x48xbf16> to vector<16x48xbf16>
    %cst_96 = arith.constant dense<0.000000e+00> : vector<16x48xf32>
    %253 = tpu.matmul %250, %252, %cst_96 {dimension_numbers = #tpu.dot_dimension_numbers<[1], [0], [0], [1], [0, 0, 1, 1], [], []>} : vector<16x16xbf16>, vector<16x48xbf16>, vector<16x48xf32> -> vector<16x48xf32>
    %254 = arith.addf %249, %253 : vector<16x48xf32>
    %255 = vector.extract_strided_slice %246 {offsets = [1, 0], sizes = [16, 16], strides = [1, 1]} : vector<18x16xbf16> to vector<16x16xbf16>
    %256 = vector.extract_strided_slice %227 {offsets = [1, 0, 0], sizes = [1, 16, 48], strides = [1, 1, 1]} : vector<3x16x48xbf16> to vector<1x16x48xbf16>
    %257 = vector.shape_cast %256 : vector<1x16x48xbf16> to vector<16x48xbf16>
    %cst_97 = arith.constant dense<0.000000e+00> : vector<16x48xf32>
    %258 = tpu.matmul %255, %257, %cst_97 {dimension_numbers = #tpu.dot_dimension_numbers<[1], [0], [0], [1], [0, 0, 1, 1], [], []>} : vector<16x16xbf16>, vector<16x48xbf16>, vector<16x48xf32> -> vector<16x48xf32>
    %259 = arith.addf %254, %258 : vector<16x48xf32>
    %260 = vector.extract_strided_slice %246 {offsets = [2, 0], sizes = [16, 16], strides = [1, 1]} : vector<18x16xbf16> to vector<16x16xbf16>
    %261 = vector.extract_strided_slice %227 {offsets = [2, 0, 0], sizes = [1, 16, 48], strides = [1, 1, 1]} : vector<3x16x48xbf16> to vector<1x16x48xbf16>
    %262 = vector.shape_cast %261 : vector<1x16x48xbf16> to vector<16x48xbf16>
    %cst_98 = arith.constant dense<0.000000e+00> : vector<16x48xf32>
    %263 = tpu.matmul %260, %262, %cst_98 {dimension_numbers = #tpu.dot_dimension_numbers<[1], [0], [0], [1], [0, 0, 1, 1], [], []>} : vector<16x16xbf16>, vector<16x48xbf16>, vector<16x48xf32> -> vector<16x48xf32>
    %264 = arith.addf %259, %263 : vector<16x48xf32>
    %265 = vector.extract_strided_slice %264 {offsets = [0, 0], sizes = [16, 16], strides = [1, 1]} : vector<16x48xf32> to vector<16x16xf32>
    %266 = vector.extract_strided_slice %264 {offsets = [0, 16], sizes = [16, 16], strides = [1, 1]} : vector<16x48xf32> to vector<16x16xf32>
    %267 = vector.extract_strided_slice %264 {offsets = [0, 32], sizes = [16, 16], strides = [1, 1]} : vector<16x48xf32> to vector<16x16xf32>
    %cst_99 = arith.constant 5.000000e-01 : f32
    %268 = vector.broadcast %cst_99 : f32 to vector<16x16xf32>
    %269 = arith.mulf %265, %268 : vector<16x16xf32>
    %270 = arith.truncf %269 : vector<16x16xf32> to vector<16x16xbf16>
    %271 = arith.truncf %266 : vector<16x16xf32> to vector<16x16xbf16>
    %272 = arith.truncf %267 : vector<16x16xf32> to vector<16x16xbf16>
    %cst_100 = arith.constant 0.000000e+00 : f32
    %273 = vector.broadcast %cst_100 : f32 to vector<16x16xf32>
    %274 = vector.extract_strided_slice %270 {offsets = [0, 0], sizes = [16, 4], strides = [1, 1]} : vector<16x16xbf16> to vector<16x4xbf16>
    %275 = vector.extract_strided_slice %271 {offsets = [0, 0], sizes = [16, 4], strides = [1, 1]} : vector<16x16xbf16> to vector<16x4xbf16>
    %cst_101 = arith.constant dense<0.000000e+00> : vector<16x16xf32>
    %276 = tpu.matmul %274, %275, %cst_101 {dimension_numbers = #tpu.dot_dimension_numbers<[1], [1], [0], [0], [0, 0, 1, 0], [], []>} : vector<16x4xbf16>, vector<16x4xbf16>, vector<16x16xf32> -> vector<16x16xf32>
    %cst_102 = arith.constant dense<0xFF800000> : vector<16xf32>
    %277 = vector.multi_reduction <maximumf>, %276, %cst_102 [1] : vector<16x16xf32> to vector<16xf32>
    %278 = vector.shape_cast %277 : vector<16xf32> to vector<16x1xf32>
    %279 = vector.broadcast %278 : vector<16x1xf32> to vector<16x16xf32>
    %280 = arith.subf %276, %279 : vector<16x16xf32>
    %281 = math.exp %280 : vector<16x16xf32>
    %cst_103 = arith.constant dense<0.000000e+00> : vector<16xf32>
    %282 = vector.multi_reduction <add>, %281, %cst_103 [1] : vector<16x16xf32> to vector<16xf32>
    %283 = vector.shape_cast %282 : vector<16xf32> to vector<16x1xf32>
    %284 = tpu.reciprocal %283 {approx = true} : vector<16x1xf32> -> vector<16x1xf32>
    %285 = vector.broadcast %284 : vector<16x1xf32> to vector<16x16xf32>
    %286 = arith.mulf %281, %285 : vector<16x16xf32>
    %287 = arith.truncf %286 : vector<16x16xf32> to vector<16x16xbf16>
    %288 = vector.extract_strided_slice %272 {offsets = [0, 0], sizes = [16, 4], strides = [1, 1]} : vector<16x16xbf16> to vector<16x4xbf16>
    %cst_104 = arith.constant dense<0.000000e+00> : vector<16x4xf32>
    %289 = tpu.matmul %287, %288, %cst_104 {dimension_numbers = #tpu.dot_dimension_numbers<[1], [0], [0], [1], [0, 0, 1, 1], [], []>} : vector<16x16xbf16>, vector<16x4xbf16>, vector<16x4xf32> -> vector<16x4xf32>
    %290 = arith.truncf %289 : vector<16x4xf32> to vector<16x4xbf16>
    %291 = vector.extract_strided_slice %230 {offsets = [0, 0], sizes = [4, 16], strides = [1, 1]} : vector<16x16xbf16> to vector<4x16xbf16>
    %cst_105 = arith.constant dense<0.000000e+00> : vector<16x16xf32>
    %292 = tpu.matmul %290, %291, %cst_105 {dimension_numbers = #tpu.dot_dimension_numbers<[1], [0], [0], [1], [0, 0, 1, 1], [], []>} : vector<16x4xbf16>, vector<4x16xbf16>, vector<16x16xf32> -> vector<16x16xf32>
    %293 = arith.addf %273, %292 : vector<16x16xf32>
    %294 = vector.extract_strided_slice %270 {offsets = [0, 4], sizes = [16, 4], strides = [1, 1]} : vector<16x16xbf16> to vector<16x4xbf16>
    %295 = vector.extract_strided_slice %271 {offsets = [0, 4], sizes = [16, 4], strides = [1, 1]} : vector<16x16xbf16> to vector<16x4xbf16>
    %cst_106 = arith.constant dense<0.000000e+00> : vector<16x16xf32>
    %296 = tpu.matmul %294, %295, %cst_106 {dimension_numbers = #tpu.dot_dimension_numbers<[1], [1], [0], [0], [0, 0, 1, 0], [], []>} : vector<16x4xbf16>, vector<16x4xbf16>, vector<16x16xf32> -> vector<16x16xf32>
    %cst_107 = arith.constant dense<0xFF800000> : vector<16xf32>
    %297 = vector.multi_reduction <maximumf>, %296, %cst_107 [1] : vector<16x16xf32> to vector<16xf32>
    %298 = vector.shape_cast %297 : vector<16xf32> to vector<16x1xf32>
    %299 = vector.broadcast %298 : vector<16x1xf32> to vector<16x16xf32>
    %300 = arith.subf %296, %299 : vector<16x16xf32>
    %301 = math.exp %300 : vector<16x16xf32>
    %cst_108 = arith.constant dense<0.000000e+00> : vector<16xf32>
    %302 = vector.multi_reduction <add>, %301, %cst_108 [1] : vector<16x16xf32> to vector<16xf32>
    %303 = vector.shape_cast %302 : vector<16xf32> to vector<16x1xf32>
    %304 = tpu.reciprocal %303 {approx = true} : vector<16x1xf32> -> vector<16x1xf32>
    %305 = vector.broadcast %304 : vector<16x1xf32> to vector<16x16xf32>
    %306 = arith.mulf %301, %305 : vector<16x16xf32>
    %307 = arith.truncf %306 : vector<16x16xf32> to vector<16x16xbf16>
    %308 = vector.extract_strided_slice %272 {offsets = [0, 4], sizes = [16, 4], strides = [1, 1]} : vector<16x16xbf16> to vector<16x4xbf16>
    %cst_109 = arith.constant dense<0.000000e+00> : vector<16x4xf32>
    %309 = tpu.matmul %307, %308, %cst_109 {dimension_numbers = #tpu.dot_dimension_numbers<[1], [0], [0], [1], [0, 0, 1, 1], [], []>} : vector<16x16xbf16>, vector<16x4xbf16>, vector<16x4xf32> -> vector<16x4xf32>
    %310 = arith.truncf %309 : vector<16x4xf32> to vector<16x4xbf16>
    %311 = vector.extract_strided_slice %230 {offsets = [4, 0], sizes = [4, 16], strides = [1, 1]} : vector<16x16xbf16> to vector<4x16xbf16>
    %cst_110 = arith.constant dense<0.000000e+00> : vector<16x16xf32>
    %312 = tpu.matmul %310, %311, %cst_110 {dimension_numbers = #tpu.dot_dimension_numbers<[1], [0], [0], [1], [0, 0, 1, 1], [], []>} : vector<16x4xbf16>, vector<4x16xbf16>, vector<16x16xf32> -> vector<16x16xf32>
    %313 = arith.addf %293, %312 : vector<16x16xf32>
    %314 = vector.extract_strided_slice %270 {offsets = [0, 8], sizes = [16, 4], strides = [1, 1]} : vector<16x16xbf16> to vector<16x4xbf16>
    %315 = vector.extract_strided_slice %271 {offsets = [0, 8], sizes = [16, 4], strides = [1, 1]} : vector<16x16xbf16> to vector<16x4xbf16>
    %cst_111 = arith.constant dense<0.000000e+00> : vector<16x16xf32>
    %316 = tpu.matmul %314, %315, %cst_111 {dimension_numbers = #tpu.dot_dimension_numbers<[1], [1], [0], [0], [0, 0, 1, 0], [], []>} : vector<16x4xbf16>, vector<16x4xbf16>, vector<16x16xf32> -> vector<16x16xf32>
    %cst_112 = arith.constant dense<0xFF800000> : vector<16xf32>
    %317 = vector.multi_reduction <maximumf>, %316, %cst_112 [1] : vector<16x16xf32> to vector<16xf32>
    %318 = vector.shape_cast %317 : vector<16xf32> to vector<16x1xf32>
    %319 = vector.broadcast %318 : vector<16x1xf32> to vector<16x16xf32>
    %320 = arith.subf %316, %319 : vector<16x16xf32>
    %321 = math.exp %320 : vector<16x16xf32>
    %cst_113 = arith.constant dense<0.000000e+00> : vector<16xf32>
    %322 = vector.multi_reduction <add>, %321, %cst_113 [1] : vector<16x16xf32> to vector<16xf32>
    %323 = vector.shape_cast %322 : vector<16xf32> to vector<16x1xf32>
    %324 = tpu.reciprocal %323 {approx = true} : vector<16x1xf32> -> vector<16x1xf32>
    %325 = vector.broadcast %324 : vector<16x1xf32> to vector<16x16xf32>
    %326 = arith.mulf %321, %325 : vector<16x16xf32>
    %327 = arith.truncf %326 : vector<16x16xf32> to vector<16x16xbf16>
    %328 = vector.extract_strided_slice %272 {offsets = [0, 8], sizes = [16, 4], strides = [1, 1]} : vector<16x16xbf16> to vector<16x4xbf16>
    %cst_114 = arith.constant dense<0.000000e+00> : vector<16x4xf32>
    %329 = tpu.matmul %327, %328, %cst_114 {dimension_numbers = #tpu.dot_dimension_numbers<[1], [0], [0], [1], [0, 0, 1, 1], [], []>} : vector<16x16xbf16>, vector<16x4xbf16>, vector<16x4xf32> -> vector<16x4xf32>
    %330 = arith.truncf %329 : vector<16x4xf32> to vector<16x4xbf16>
    %331 = vector.extract_strided_slice %230 {offsets = [8, 0], sizes = [4, 16], strides = [1, 1]} : vector<16x16xbf16> to vector<4x16xbf16>
    %cst_115 = arith.constant dense<0.000000e+00> : vector<16x16xf32>
    %332 = tpu.matmul %330, %331, %cst_115 {dimension_numbers = #tpu.dot_dimension_numbers<[1], [0], [0], [1], [0, 0, 1, 1], [], []>} : vector<16x4xbf16>, vector<4x16xbf16>, vector<16x16xf32> -> vector<16x16xf32>
    %333 = arith.addf %313, %332 : vector<16x16xf32>
    %334 = vector.extract_strided_slice %270 {offsets = [0, 12], sizes = [16, 4], strides = [1, 1]} : vector<16x16xbf16> to vector<16x4xbf16>
    %335 = vector.extract_strided_slice %271 {offsets = [0, 12], sizes = [16, 4], strides = [1, 1]} : vector<16x16xbf16> to vector<16x4xbf16>
    %cst_116 = arith.constant dense<0.000000e+00> : vector<16x16xf32>
    %336 = tpu.matmul %334, %335, %cst_116 {dimension_numbers = #tpu.dot_dimension_numbers<[1], [1], [0], [0], [0, 0, 1, 0], [], []>} : vector<16x4xbf16>, vector<16x4xbf16>, vector<16x16xf32> -> vector<16x16xf32>
    %cst_117 = arith.constant dense<0xFF800000> : vector<16xf32>
    %337 = vector.multi_reduction <maximumf>, %336, %cst_117 [1] : vector<16x16xf32> to vector<16xf32>
    %338 = vector.shape_cast %337 : vector<16xf32> to vector<16x1xf32>
    %339 = vector.broadcast %338 : vector<16x1xf32> to vector<16x16xf32>
    %340 = arith.subf %336, %339 : vector<16x16xf32>
    %341 = math.exp %340 : vector<16x16xf32>
    %cst_118 = arith.constant dense<0.000000e+00> : vector<16xf32>
    %342 = vector.multi_reduction <add>, %341, %cst_118 [1] : vector<16x16xf32> to vector<16xf32>
    %343 = vector.shape_cast %342 : vector<16xf32> to vector<16x1xf32>
    %344 = tpu.reciprocal %343 {approx = true} : vector<16x1xf32> -> vector<16x1xf32>
    %345 = vector.broadcast %344 : vector<16x1xf32> to vector<16x16xf32>
    %346 = arith.mulf %341, %345 : vector<16x16xf32>
    %347 = arith.truncf %346 : vector<16x16xf32> to vector<16x16xbf16>
    %348 = vector.extract_strided_slice %272 {offsets = [0, 12], sizes = [16, 4], strides = [1, 1]} : vector<16x16xbf16> to vector<16x4xbf16>
    %cst_119 = arith.constant dense<0.000000e+00> : vector<16x4xf32>
    %349 = tpu.matmul %347, %348, %cst_119 {dimension_numbers = #tpu.dot_dimension_numbers<[1], [0], [0], [1], [0, 0, 1, 1], [], []>} : vector<16x16xbf16>, vector<16x4xbf16>, vector<16x4xf32> -> vector<16x4xf32>
    %350 = arith.truncf %349 : vector<16x4xf32> to vector<16x4xbf16>
    %351 = vector.extract_strided_slice %230 {offsets = [12, 0], sizes = [4, 16], strides = [1, 1]} : vector<16x16xbf16> to vector<4x16xbf16>
    %cst_120 = arith.constant dense<0.000000e+00> : vector<16x16xf32>
    %352 = tpu.matmul %350, %351, %cst_120 {dimension_numbers = #tpu.dot_dimension_numbers<[1], [0], [0], [1], [0, 0, 1, 1], [], []>} : vector<16x4xbf16>, vector<4x16xbf16>, vector<16x16xf32> -> vector<16x16xf32>
    %353 = arith.addf %333, %352 : vector<16x16xf32>
    %354 = vector.shape_cast %232 : vector<16xf32> to vector<1x16xf32>
    %355 = vector.broadcast %354 : vector<1x16xf32> to vector<16x16xf32>
    %356 = arith.addf %353, %355 : vector<16x16xf32>
    %357 = arith.addf %226, %356 : vector<16x16xf32>
    %cst_121 = arith.constant dense<0.000000e+00> : vector<16xf32>
    %358 = vector.multi_reduction <add>, %357, %cst_121 [1] : vector<16x16xf32> to vector<16xf32>
    %359 = vector.shape_cast %358 : vector<16xf32> to vector<16x1xf32>
    %cst_122 = arith.constant 1.600000e+01 : f32
    %360 = vector.broadcast %cst_122 : f32 to vector<16x1xf32>
    %361 = arith.divf %359, %360 : vector<16x1xf32>
    %362 = vector.broadcast %361 : vector<16x1xf32> to vector<16x16xf32>
    %363 = arith.subf %357, %362 : vector<16x16xf32>
    %364 = arith.mulf %363, %363 : vector<16x16xf32>
    %cst_123 = arith.constant dense<0.000000e+00> : vector<16xf32>
    %365 = vector.multi_reduction <add>, %364, %cst_123 [1] : vector<16x16xf32> to vector<16xf32>
    %366 = vector.shape_cast %365 : vector<16xf32> to vector<16x1xf32>
    %cst_124 = arith.constant 1.600000e+01 : f32
    %367 = vector.broadcast %cst_124 : f32 to vector<16x1xf32>
    %368 = arith.divf %366, %367 : vector<16x1xf32>
    %369 = vector.broadcast %361 : vector<16x1xf32> to vector<16x16xf32>
    %370 = arith.subf %357, %369 : vector<16x16xf32>
    %cst_125 = arith.constant 9.99999974E-6 : f32
    %371 = vector.broadcast %cst_125 : f32 to vector<16x1xf32>
    %372 = arith.addf %368, %371 : vector<16x1xf32>
    %373 = math.rsqrt %372 : vector<16x1xf32>
    %374 = vector.broadcast %373 : vector<16x1xf32> to vector<16x16xf32>
    %375 = arith.mulf %370, %374 : vector<16x16xf32>
    %376 = vector.shape_cast %234 : vector<16xf32> to vector<1x16xf32>
    %377 = vector.broadcast %376 : vector<1x16xf32> to vector<16x16xf32>
    %378 = arith.mulf %375, %377 : vector<16x16xf32>
    %379 = vector.shape_cast %236 : vector<16xf32> to vector<1x16xf32>
    %380 = vector.broadcast %379 : vector<1x16xf32> to vector<16x16xf32>
    %381 = arith.addf %378, %380 : vector<16x16xf32>
    %cst_126 = arith.constant 0.000000e+00 : f32
    %382 = vector.broadcast %cst_126 : f32 to vector<1x16xf32>
    %383 = tpu.concatenate %382, %381, %382 in 0 : vector<1x16xf32>, vector<16x16xf32>, vector<1x16xf32> -> vector<18x16xf32>
    %384 = arith.truncf %383 : vector<18x16xf32> to vector<18x16xbf16>
    %385 = vector.shape_cast %239 : vector<8xf32> to vector<1x8xf32>
    %386 = vector.shape_cast %385 : vector<1x8xf32> to vector<1x8xf32>
    %387 = vector.broadcast %386 : vector<1x8xf32> to vector<16x8xf32>
    %388 = vector.extract_strided_slice %384 {offsets = [0, 0], sizes = [16, 16], strides = [1, 1]} : vector<18x16xbf16> to vector<16x16xbf16>
    %389 = vector.extract_strided_slice %237 {offsets = [0, 0, 0], sizes = [1, 16, 8], strides = [1, 1, 1]} : vector<3x16x8xbf16> to vector<1x16x8xbf16>
    %390 = vector.shape_cast %389 : vector<1x16x8xbf16> to vector<16x8xbf16>
    %cst_127 = arith.constant dense<0.000000e+00> : vector<16x8xf32>
    %391 = tpu.matmul %388, %390, %cst_127 {dimension_numbers = #tpu.dot_dimension_numbers<[1], [0], [0], [1], [0, 0, 1, 1], [], []>} : vector<16x16xbf16>, vector<16x8xbf16>, vector<16x8xf32> -> vector<16x8xf32>
    %392 = arith.addf %387, %391 : vector<16x8xf32>
    %393 = vector.extract_strided_slice %384 {offsets = [1, 0], sizes = [16, 16], strides = [1, 1]} : vector<18x16xbf16> to vector<16x16xbf16>
    %394 = vector.extract_strided_slice %237 {offsets = [1, 0, 0], sizes = [1, 16, 8], strides = [1, 1, 1]} : vector<3x16x8xbf16> to vector<1x16x8xbf16>
    %395 = vector.shape_cast %394 : vector<1x16x8xbf16> to vector<16x8xbf16>
    %cst_128 = arith.constant dense<0.000000e+00> : vector<16x8xf32>
    %396 = tpu.matmul %393, %395, %cst_128 {dimension_numbers = #tpu.dot_dimension_numbers<[1], [0], [0], [1], [0, 0, 1, 1], [], []>} : vector<16x16xbf16>, vector<16x8xbf16>, vector<16x8xf32> -> vector<16x8xf32>
    %397 = arith.addf %392, %396 : vector<16x8xf32>
    %398 = vector.extract_strided_slice %384 {offsets = [2, 0], sizes = [16, 16], strides = [1, 1]} : vector<18x16xbf16> to vector<16x16xbf16>
    %399 = vector.extract_strided_slice %237 {offsets = [2, 0, 0], sizes = [1, 16, 8], strides = [1, 1, 1]} : vector<3x16x8xbf16> to vector<1x16x8xbf16>
    %400 = vector.shape_cast %399 : vector<1x16x8xbf16> to vector<16x8xbf16>
    %cst_129 = arith.constant dense<0.000000e+00> : vector<16x8xf32>
    %401 = tpu.matmul %398, %400, %cst_129 {dimension_numbers = #tpu.dot_dimension_numbers<[1], [0], [0], [1], [0, 0, 1, 1], [], []>} : vector<16x16xbf16>, vector<16x8xbf16>, vector<16x8xf32> -> vector<16x8xf32>
    %402 = arith.addf %397, %401 : vector<16x8xf32>
    %cst_130 = arith.constant 0.000000e+00 : f32
    %403 = vector.broadcast %cst_130 : f32 to vector<16x8xf32>
    %404 = arith.maximumf %402, %403 : vector<16x8xf32>
    %cst_131 = arith.constant dense<0.000000e+00> : vector<16xf32>
    %405 = vector.multi_reduction <add>, %404, %cst_131 [1] : vector<16x8xf32> to vector<16xf32>
    %406 = vector.shape_cast %405 : vector<16xf32> to vector<16x1xf32>
    %cst_132 = arith.constant 8.000000e+00 : f32
    %407 = vector.broadcast %cst_132 : f32 to vector<16x1xf32>
    %408 = arith.divf %406, %407 : vector<16x1xf32>
    %409 = vector.broadcast %408 : vector<16x1xf32> to vector<16x8xf32>
    %410 = arith.subf %404, %409 : vector<16x8xf32>
    %411 = arith.mulf %410, %410 : vector<16x8xf32>
    %cst_133 = arith.constant dense<0.000000e+00> : vector<16xf32>
    %412 = vector.multi_reduction <add>, %411, %cst_133 [1] : vector<16x8xf32> to vector<16xf32>
    %413 = vector.shape_cast %412 : vector<16xf32> to vector<16x1xf32>
    %cst_134 = arith.constant 8.000000e+00 : f32
    %414 = vector.broadcast %cst_134 : f32 to vector<16x1xf32>
    %415 = arith.divf %413, %414 : vector<16x1xf32>
    %416 = vector.broadcast %408 : vector<16x1xf32> to vector<16x8xf32>
    %417 = arith.subf %404, %416 : vector<16x8xf32>
    %cst_135 = arith.constant 9.99999974E-6 : f32
    %418 = vector.broadcast %cst_135 : f32 to vector<16x1xf32>
    %419 = arith.addf %415, %418 : vector<16x1xf32>
    %420 = math.rsqrt %419 : vector<16x1xf32>
    %421 = vector.broadcast %420 : vector<16x1xf32> to vector<16x8xf32>
    %422 = arith.mulf %417, %421 : vector<16x8xf32>
    %423 = vector.shape_cast %241 : vector<8xf32> to vector<1x8xf32>
    %424 = vector.broadcast %423 : vector<1x8xf32> to vector<16x8xf32>
    %425 = arith.mulf %422, %424 : vector<16x8xf32>
    %426 = vector.shape_cast %243 : vector<8xf32> to vector<1x8xf32>
    %427 = vector.broadcast %426 : vector<1x8xf32> to vector<16x8xf32>
    %428 = arith.addf %425, %427 : vector<16x8xf32>
    %c0_136 = arith.constant 0 : index
    %c0_137 = arith.constant 0 : index
    %c0_138 = arith.constant 0 : index
    %429 = vector.load %arg24[%c0_136, %c0_137, %c0_138] : memref<1x16x8xf32, #tpu.memory_space<vmem>>, vector<1x16x8xf32>
    %430 = vector.shape_cast %429 : vector<1x16x8xf32> to vector<16x8xf32>
    %431 = vector.shape_cast %428 : vector<16x8xf32> to vector<1x16x8xf32>
    tpu.vector_store %arg24[%c0_136, %c0_137, %c0_138], %431 {strides = array<i32>} : memref<1x16x8xf32, #tpu.memory_space<vmem>>, vector<1x16x8xf32>,
    return
  }
  func.func @transform_0(%arg0: i32) -> (i32, i32, i32) {
    %c0_i32 = arith.constant 0 : i32
    %c0_i32_0 = arith.constant 0 : i32
    %c0_i32_1 = arith.constant 0 : i32
    return %arg0, %c0_i32, %c0_i32_0 : i32, i32, i32
  }
  func.func @transform_1(%arg0: i32) -> (i32, i32) {
    %c0_i32 = arith.constant 0 : i32
    %c0_i32_0 = arith.constant 0 : i32
    %c0_i32_1 = arith.constant 0 : i32
    return %c0_i32, %c0_i32_0 : i32, i32
  }
  func.func @transform_2(%arg0: i32) -> (i32, i32, i32) {
    %c0_i32 = arith.constant 0 : i32
    %c0_i32_0 = arith.constant 0 : i32
    %c0_i32_1 = arith.constant 0 : i32
    %c0_i32_2 = arith.constant 0 : i32
    return %c0_i32, %c0_i32_0, %c0_i32_1 : i32, i32, i32
  }
  func.func @transform_3(%arg0: i32) -> (i32, i32, i32) {
    %c0_i32 = arith.constant 0 : i32
    %c0_i32_0 = arith.constant 0 : i32
    %c0_i32_1 = arith.constant 0 : i32
    %c0_i32_2 = arith.constant 0 : i32
    return %c0_i32, %c0_i32_0, %c0_i32_1 : i32, i32, i32
  }
  func.func @transform_4(%arg0: i32) -> (i32, i32) {
    %c0_i32 = arith.constant 0 : i32
    %c0_i32_0 = arith.constant 0 : i32
    %c0_i32_1 = arith.constant 0 : i32
    return %c0_i32, %c0_i32_0 : i32, i32
  }
  func.func @transform_5(%arg0: i32) -> (i32, i32) {
    %c0_i32 = arith.constant 0 : i32
    %c0_i32_0 = arith.constant 0 : i32
    %c0_i32_1 = arith.constant 0 : i32
    return %c0_i32, %c0_i32_0 : i32, i32
  }
  func.func @transform_6(%arg0: i32) -> (i32, i32) {
    %c0_i32 = arith.constant 0 : i32
    %c0_i32_0 = arith.constant 0 : i32
    %c0_i32_1 = arith.constant 0 : i32
    return %c0_i32, %c0_i32_0 : i32, i32
  }
  func.func @transform_7(%arg0: i32) -> (i32, i32) {
    %c0_i32 = arith.constant 0 : i32
    %c0_i32_0 = arith.constant 0 : i32
    %c0_i32_1 = arith.constant 0 : i32
    return %c0_i32, %c0_i32_0 : i32, i32
  }
  func.func @transform_8(%arg0: i32) -> (i32, i32) {
    %c0_i32 = arith.constant 0 : i32
    %c0_i32_0 = arith.constant 0 : i32
    %c0_i32_1 = arith.constant 0 : i32
    return %c0_i32, %c0_i32_0 : i32, i32
  }
  func.func @transform_9(%arg0: i32) -> (i32, i32, i32) {
    %c0_i32 = arith.constant 0 : i32
    %c0_i32_0 = arith.constant 0 : i32
    %c0_i32_1 = arith.constant 0 : i32
    %c0_i32_2 = arith.constant 0 : i32
    return %c0_i32, %c0_i32_0, %c0_i32_1 : i32, i32, i32
  }
  func.func @transform_10(%arg0: i32) -> (i32, i32) {
    %c0_i32 = arith.constant 0 : i32
    %c0_i32_0 = arith.constant 0 : i32
    %c0_i32_1 = arith.constant 0 : i32
    return %c0_i32, %c0_i32_0 : i32, i32
  }
  func.func @transform_11(%arg0: i32) -> (i32, i32) {
    %c0_i32 = arith.constant 0 : i32
    %c0_i32_0 = arith.constant 0 : i32
    %c0_i32_1 = arith.constant 0 : i32
    return %c0_i32, %c0_i32_0 : i32, i32
  }
  func.func @transform_12(%arg0: i32) -> (i32, i32) {
    %c0_i32 = arith.constant 0 : i32
    %c0_i32_0 = arith.constant 0 : i32
    %c0_i32_1 = arith.constant 0 : i32
    return %c0_i32, %c0_i32_0 : i32, i32
  }
  func.func @transform_13(%arg0: i32) -> (i32, i32, i32) {
    %c0_i32 = arith.constant 0 : i32
    %c0_i32_0 = arith.constant 0 : i32
    %c0_i32_1 = arith.constant 0 : i32
    %c0_i32_2 = arith.constant 0 : i32
    return %c0_i32, %c0_i32_0, %c0_i32_1 : i32, i32, i32
  }
  func.func @transform_14(%arg0: i32) -> (i32, i32) {
    %c0_i32 = arith.constant 0 : i32
    %c0_i32_0 = arith.constant 0 : i32
    %c0_i32_1 = arith.constant 0 : i32
    return %c0_i32, %c0_i32_0 : i32, i32
  }
  func.func @transform_15(%arg0: i32) -> (i32, i32) {
    %c0_i32 = arith.constant 0 : i32
    %c0_i32_0 = arith.constant 0 : i32
    %c0_i32_1 = arith.constant 0 : i32
    return %c0_i32, %c0_i32_0 : i32, i32
  }
  func.func @transform_16(%arg0: i32) -> (i32, i32) {
    %c0_i32 = arith.constant 0 : i32
    %c0_i32_0 = arith.constant 0 : i32
    %c0_i32_1 = arith.constant 0 : i32
    return %c0_i32, %c0_i32_0 : i32, i32
  }
  func.func @transform_17(%arg0: i32) -> (i32, i32) {
    %c0_i32 = arith.constant 0 : i32
    %c0_i32_0 = arith.constant 0 : i32
    %c0_i32_1 = arith.constant 0 : i32
    return %c0_i32, %c0_i32_0 : i32, i32
  }
  func.func @transform_18(%arg0: i32) -> (i32, i32) {
    %c0_i32 = arith.constant 0 : i32
    %c0_i32_0 = arith.constant 0 : i32
    %c0_i32_1 = arith.constant 0 : i32
    return %c0_i32, %c0_i32_0 : i32, i32
  }
  func.func @transform_19(%arg0: i32) -> (i32, i32, i32) {
    %c0_i32 = arith.constant 0 : i32
    %c0_i32_0 = arith.constant 0 : i32
    %c0_i32_1 = arith.constant 0 : i32
    %c0_i32_2 = arith.constant 0 : i32
    return %c0_i32, %c0_i32_0, %c0_i32_1 : i32, i32, i32
  }
  func.func @transform_20(%arg0: i32) -> (i32, i32) {
    %c0_i32 = arith.constant 0 : i32
    %c0_i32_0 = arith.constant 0 : i32
    %c0_i32_1 = arith.constant 0 : i32
    return %c0_i32, %c0_i32_0 : i32, i32
  }
  func.func @transform_21(%arg0: i32) -> (i32, i32) {
    %c0_i32 = arith.constant 0 : i32
    %c0_i32_0 = arith.constant 0 : i32
    %c0_i32_1 = arith.constant 0 : i32
    return %c0_i32, %c0_i32_0 : i32, i32
  }
  func.func @transform_22(%arg0: i32) -> (i32, i32) {
    %c0_i32 = arith.constant 0 : i32
    %c0_i32_0 = arith.constant 0 : i32
    %c0_i32_1 = arith.constant 0 : i32
    return %c0_i32, %c0_i32_0 : i32, i32
  }
  func.func @transform_23(%arg0: i32) -> (i32, i32, i32) {
    %c0_i32 = arith.constant 0 : i32
    %c0_i32_0 = arith.constant 0 : i32
    %c0_i32_1 = arith.constant 0 : i32
    return %arg0, %c0_i32, %c0_i32_0 : i32, i32, i32
  }
}

</mosaic_0001>

<bundles_post_ra>
// kernel: cnn_adformer2_forward.1
= control target key start
LH: loop header
LB: loop body
LE: loop exit
PB: predicated region body
PF: predicated region fallthrough
CT: control target
= control target key end

     0   :  { %s3526_s0 = inlined_call_operand.vmem [shape: f32[2,16,4], index: 0, kind: input, shape index: {}]   ;;  %s3527_s1 = inlined_call_operand.vmem [shape: f32[16,32], index: 1, kind: input, shape index: {}]   ;;  %s3528_s2 = inlined_call_operand.hbm [shape: bf16[3,4,32], index: 2, kind: input, shape index: {}]   ;;  %s3529_s3 = inlined_call_operand.vmem [shape: bf16[3,32,96], index: 3, kind: input, shape index: {}]   ;;  %s3530_s4 = inlined_call_operand.vmem [shape: f32[1,96], index: 4, kind: input, shape index: {}]   ;;  %s3531_s5 = inlined_call_operand.vmem [shape: bf16[32,32], index: 5, kind: input, shape index: {}]   ;;  %s3532_s6 = inlined_call_operand.vmem [shape: f32[1,32], index: 6, kind: input, shape index: {}]   ;;  %s3533_s7 = inlined_call_operand.vmem [shape: f32[1,32], index: 7, kind: input, shape index: {}]   ;;  %s3534_s8 = inlined_call_operand.vmem [shape: f32[1,32], index: 8, kind: input, shape index: {}]   ;;  %s3535_s9 = inlined_call_operand.vmem [shape: bf16[3,32,16], index: 9, kind: input, shape index: {}]   ;;  %s3536_s10 = inlined_call_operand.vmem [shape: f32[1,16], index: 10, kind: input, shape index: {}]   ;;  %s3537_s11 = inlined_call_operand.vmem [shape: f32[1,16], index: 11, kind: input, shape index: {}]   ;;  %s3538_s12 = inlined_call_operand.vmem [shape: f32[1,16], index: 12, kind: input, shape index: {}]   ;;  %s3539_s13 = inlined_call_operand.vmem [shape: bf16[3,16,48], index: 13, kind: input, shape index: {}]   ;;  %s3540_s14 = inlined_call_operand.vmem [shape: f32[1,48], index: 14, kind: input, shape index: {}]   ;;  %s3541_s15 = inlined_call_operand.vmem [shape: bf16[16,16], index: 15, kind: input, shape index: {}]   ;;  %s3542_s16 = inlined_call_operand.vmem [shape: f32[1,16], index: 16, kind: input, shape index: {}]   ;;  %s3543_s17 = inlined_call_operand.vmem [shape: f32[1,16], index: 17, kind: input, shape index: {}]   ;;  %s3544_s18 = inlined_call_operand.vmem [shape: f32[1,16], index: 18, kind: input, shape index: {}]   ;;  %s3545_s19 = inlined_call_operand.vmem [shape: bf16[3,16,8], index: 19, kind: input, shape index: {}]   ;;  %s3546_s20 = inlined_call_operand.hbm [shape: f32[1,8], index: 20, kind: input, shape index: {}]   ;;  %s3547_s21 = inlined_call_operand.hbm [shape: f32[1,8], index: 21, kind: input, shape index: {}]   ;;  %s3548_s22 = inlined_call_operand.hbm [shape: f32[1,8], index: 22, kind: input, shape index: {}]   ;;  %s3549_s23 = inlined_call_operand.vmem [shape: f32[2,16,8], index: 23, kind: output, shape index: {}]  }
   0x1   :  { %3554 = sst [smem:[#allocation13_spill]] %s3526_s0 }
   0x2   :  { %3555 = sst [smem:[#allocation14_spill]] %s3527_s1 }
   0x3   :  { %3556 = sst [smem:[#allocation15_spill]] %s3528_s2 }
   0x4   :  { %3557 = sst [smem:[#allocation16_spill]] %s3529_s3 }
   0x5   :  { %3558 = sst [smem:[#allocation17_spill]] %s3530_s4 }
   0x6   :  { %3559 = sst [smem:[#allocation18_spill]] %s3531_s5 }
   0x7   :  { %3560 = sst [smem:[#allocation19_spill]] %s3532_s6 }
   0x8   :  { %3561 = sst [smem:[#allocation20_spill]] %s3533_s7 }
   0x9   :  { %3562 = sst [smem:[#allocation21_spill]] %s3544_s18 }
   0xa   :  { %3563 = sst [smem:[#allocation22_spill]] %s3546_s20 }
   0xb   :  { %3564 = sst [smem:[#allocation23_spill]] %s3549_s23 }
   0xc   :  { %28 = vsyncpa [#allocation3], 0 }
   0xd   :  { %29 = vsyncpa [#allocation5], 0 }
   0xe   :  { %30 = vsyncpa [#allocation8], 0  ;;  %s3136_s4 = smov 0  }
   0xf LB: > { %3565 = sst [smem:[#allocation12_spill]] %s2988_s4  ;;  %s3145_s5 = sadd.s32 4294967295, %s2988_s4   ;;  %s2988_s4 = sphi %s3136_s4, %s36_s4  }
  0x10   : > { %s3566_s20 = sld [smem:[#allocation22_spill]]  ;;  %p2531_p0 = scmp.ge.s32.totalorder %s2988_s4, 1 }
  0x11   : > { %p555_p1 = scmp.lt.s32.totalorder %s2988_s4, 3  ;;  %p2708_p2 = scmp.eq.s32.totalorder %s3145_s5, 0 }
  0x12   : > { %s2990_s26 = smov [#allocation4]   ;;  %s3568_s7 = sld [smem:[#allocation15_spill]] }
  0x13   : > { %p3150_p3 = pnand %p2531_p0, %p555_p1  ;;  %s637_s2 = sshll.u32 %s2990_s26, 4  ;;  %s638_s2 = int_to_ptr.vmem [resolvable:$true] %s637_s2 }
  0x14   : > { %s2991_s3 = smov [#allocation2]   ;;  %s647_s26 = sshll.u32 %s3547_s21, 4  ;;  %s648_s26 = int_to_ptr.hbm [resolvable:$true] %s647_s26 }
  0x15   : > { %p2695_p4 = pneg %p3150_p3  ;;  %s571_s0 = sshll.u32 %s2991_s3, 4  ;;  %s572_s0 = int_to_ptr.vmem [resolvable:$true] %s571_s0 }
  0x16   : > { %s635_s25 = sshll.u32 %s3566_s20, 4  ;;  %s2992_s6 = smov 32   ;;  %s636_s25 = int_to_ptr.hbm [resolvable:$true] %s635_s25 }
  0x17   : > { %p3161_p5 = pnand %p2708_p2, %p2695_p4  ;;  %s2993_s27 = smov 2  }
  0x18   : > { %s569_s28 = sshll.u32 %s3568_s7, 4  ;;  %s2994_s7 = smov [#allocation6]   ;;  %s570_s28 = int_to_ptr.hbm [resolvable:$true] %s569_s28 }
  0x19   : > { %2701 = dma.hbm_to_vmem [thread:$0]  (!%p3161_p5), %s636_s25, 16, %s638_s2, [#allocation5]  }
  0x1a   : > { %2698 = dma.hbm_to_vmem [thread:$0]  (!%p3161_p5), %s570_s28, 96, %s572_s0, [#allocation3], %s2992_s6, %s2992_s6, %s2993_s27  }
  0x1b   : > { %s649_s20 = sshll.u32 %s2994_s7, 4  ;;  %s659_s18 = sshll.u32 %s3548_s22, 4  ;;  %s650_s20 = int_to_ptr.vmem [resolvable:$true] %s649_s20  ;;  %s660_s18 = int_to_ptr.hbm [resolvable:$true] %s659_s18 }
  0x1c   : > { %2704 = dma.hbm_to_vmem [thread:$0]  (!%p3161_p5), %s648_s26, 16, %s650_s20, [#allocation5]  }
  0x1d   : > { %s2995_s3 = smov [#allocation7]   ;;  %682 = sbr.rel (%p3150_p3) target bundleno = 4637 (0x121d), region = 112 }
  0x1e   : > { %s661_s30 = sshll.u32 %s2995_s3, 4  ;;  %s662_s30 = int_to_ptr.vmem [resolvable:$true] %s661_s30 }
  0x1f   : > { %2707 = dma.hbm_to_vmem [thread:$0]  (!%p3161_p5), %s660_s18, 16, %s662_s30, [#allocation8]  }
  0x22   : > { %2975 = dma.done.wait (%p2708_p2), [#allocation3], 96  }
  0x23   : > { %2977 = vsyncadd (%p2708_p2), [#allocation3], 4294967200 }
  0x24   : > { %2979 = dma.done.wait (%p2708_p2), [#allocation5], 32  }
  0x25   : > { %2981 = vsyncadd (%p2708_p2), [#allocation5], 4294967264 }
  0x26   : > { %2983 = dma.done.wait (%p2708_p2), [#allocation8], 16  }
  0x27   : > { %2985 = vsyncadd (%p2708_p2), [#allocation8], 4294967280  ;;  %p762_p6 = scmp.lt.s32.totalorder %s3145_s5, 1  ;;  %vm813_vm0 = vcmask 1041408   ;;  %s3570_s4 = sld [smem:[#allocation13_spill]]  ;;  %vm782_vm1 = vcmask 1040384  }
  0x28   : > { %v775_v0 = vld [vmem:[#allocation2] sm:$0x3]  ;;  %v777_v6 = vld [vmem:[#allocation2 + $0x4] sm:$0x3]  ;;  %v776_v8 = vld [vmem:[#allocation2 + $0x2] sm:$0x3] }
  0x29   : > { %s3581_s5 = smov (!%p762_p6, %s3145_s5), 1  ;;  %v834_v3 = vsel %vm813_vm0, %v775_v0, 0  ;;  %v858_v7 = vsel %vm813_vm0, %v777_v6, 0  ;;  %v815_v11 = vsel %vm813_vm0, %v776_v8, 0  ;;  %vm809_vm2 = vcmask 31744   ;;  %s3571_s28 = sld [smem:[#allocation16_spill]] }
  0x2a   : > { %s2659_s18 = sshll.u32 %s3581_s5, 4  ;;  %843 = vmatpush.bf16.msra.mxu1 %v834_v3  ;;  %867 = vmatpush.bf16.msra.mxu2 %v858_v7  ;;  %vm850_vm3 = vcmask 1046528   ;;  %vm796_vm4 = vsmask.f32 7424  ;;  %vm948_vm5 = vcmask 261120   ;;  %s3573_s24 = sld [smem:[#allocation17_spill]] }
  0x2b   : > { %824 = vmatpush.bf16.msra.mxu0 %v815_v11  ;;  %s2996_s26 = smov 96   ;;  %vm1065_vm6 = vcmask 64512   ;;  %vm1086_vm7 = vcmask 130048   ;;  %s2997_s6 = smov 88   ;;  %vm1202_vm8 = vcmask 1043456  }
  0x2c   : > { %s2998_s27 = smov 64   ;;  %s2999_s7 = smov 72  }
  0x2d   : > { %s766_s25 = scalar_lea.vmem %s3570_s4, %s2659_s18  ;;  %s3000_s3 = smov 120  }
  0x2e   : > { %v773_v1 = vld [vmem:[%s766_s25] sm:$0xff]  ;;  %v774_v2 = vld [vmem:[%s766_s25 + $0x8] sm:$0xff]  ;;  %s3572_s25 = sld [smem:[#allocation14_spill]]  ;;  %s3001_s30 = smov 104  }
  0x2f   : > { %v779_v4 = vrot.slane %v774_v2, 7  ;;  %v783_v5 = vrot.slane %v773_v1, 7  ;;  %v2662_v28 = vld [vmem:[%s3571_s28 + $0x8] sm:$0xff]  ;;  %v2661_v30 = vld [vmem:[%s3571_s28] sm:$0xff]  ;;  %v2664_v31 = vld [vmem:[%s3571_s28 + $0x18] sm:$0xff]  ;;  %s3002_s20 = smov 80  }
  0x30   : > { %958 = vmatpush.bf16.msra.mxu3 %v2662_v28  ;;  %v2666_v29 = vld [vmem:[%s3571_s28 + $0x28] sm:$0xff]  ;;  %v2665_v32 = vld [vmem:[%s3571_s28 + $0x20] sm:$0xff]  ;;  %1003 = vmatpush.bf16.msrb.mxu0 %v2664_v31  ;;  %v2663_v33 = vld [vmem:[%s3571_s28 + $0x10] sm:$0xff]  ;;  %s3003_s23 = smov 112   ;;  %s3574_s2 = sld [smem:[#allocation18_spill]] }
  0x31   : > { %v784_v9 = vsel %vm782_vm1, %v783_v5, %v779_v4  ;;  %v787_v10 = vsel %vm782_vm1, %v779_v4, %v783_v5  ;;  %1037 = vmatpush.bf16.msrb.mxu1 %v2666_v29  ;;  %v2750_v7 = vld [vmem:[%s3573_s24] ss:$0 sm:$0xff]  ;;  %s3004_s29 = smov 56   ;;  %s3005_s0 = smov 48  }
  0x32   : > { %v788_v12 = vpack.c.bf16 %v787_v10, %v787_v10  ;;  %v789_v13 = vpack.c.bf16 %v784_v9, %v784_v9  ;;  %s3006_s24 = smov 40   ;;  %s3577_s1 = sld [smem:[#allocation21_spill]] }
  0x34   : > { %v792_v14 = vunpack.c.l.b16 %v788_v12  ;;  %v793_v15 = vunpack.c.l.b16 %v789_v13  ;;  %959 = vmatpush.bf16.msra.mxu3 %v2661_v30  ;;  %1004 = vmatpush.bf16.msrb.mxu0 %v2663_v33  ;;  %v876_v38 = vld [vmem:[%s3572_s25] sm:$0xff]  ;;  %v877_v46 = vld [vmem:[%s3572_s25 + $0x8] sm:$0xff] }
  0x35   : > { %1038 = vmatpush.bf16.msrb.mxu1 %v2665_v32 }
  0x36   : > { %v794_v16 = vpack.c.b16 %v793_v15, %v792_v14  ;;  %v795_v17 = vpack.c.b16 %v792_v14, %v792_v14 }
  0x38   : > { %2547 = vmatmul.msk.bf16.vlgmr.msra.gmra.mxu1 %vm809_vm2, %v794_v16  ;;  %v851_v18 = vrot.slane %v794_v16, 1  ;;  %v852_v19 = vrot.slane %v795_v17, 1  ;;  %v798_v20 = vshrl.u32 %v794_v16, 16  ;;  %v800_v21 = vshll.u32 %v794_v16, 16 }
  0x39   : > { %v805_v22 = vshll.u32 %v795_v17, 16 }
  0x3a   : > { %v853_v23 = vsel %vm850_vm3, %v851_v18, %v852_v19  ;;  %v802_v24 = vrot.slane %v800_v21, 1 }
  0x3b   : > { %2548 = vmatmul.msk.bf16.vlgmr.msra.gmra.mxu2 %vm809_vm2, %v853_v23  ;;  %v807_v25 = vrot.slane %v805_v22, 1 }
  0x3c   : > { %v803_v26 = vor.u32 %v802_v24, %v798_v20 }
  0x3e   : > { %v808_v27 = vsel %vm796_vm4, %v803_v26, %v807_v25 }
  0x3f   : > { %2546 = vmatmul.msk.bf16.vlgmr.msra.gmra.mxu0 %vm809_vm2, %v808_v27 }
  0xb5   : > { %v845_v34 = vpop.f32.mrf.mxu1 }
  0xbc   : > { %v826_v35 = vpop.f32.mrf.mxu0 }
  0xbd   : > { %v846_v36 = vadd.f32 %v845_v34, %v826_v35  ;;  %v847_v41 = vpop.f32.mrf.mxu1 }
  0xbe   : > { %v869_v37 = vpop.f32.mrf.mxu2 }
  0xbf   : > { %v874_v39 = vadd.f32 %v869_v37, %v846_v36 }
  0xc1   : > { %v3234_v40 = vadd.f32 %v876_v38, %v874_v39 }
  0xc3   : > { %v917_v43 = vrot.slane %v3234_v40, 7 }
  0xc4   : > { %v828_v42 = vpop.f32.mrf.mxu0 }
  0xc5   : > { %v848_v44 = vadd.f32 %v847_v41, %v828_v42  ;;  %v923_v48 = vsel %vm782_vm1, 0.0, %v917_v43 }
  0xc6   : > { %v871_v45 = vpop.f32.mrf.mxu2  ;;  %v925_v51 = vpack.c.bf16 %v923_v48, %v923_v48 }
  0xc7   : > { %v875_v47 = vadd.f32 %v871_v45, %v848_v44 }
  0xc8   : > { %v933_v56 = vunpack.c.l.b16 %v925_v51 }
  0xc9   : > { %v3241_v49 = vadd.f32 %v877_v46, %v875_v47 }
  0xcb   : > { %v918_v50 = vrot.slane %v3241_v49, 7 }
  0xcd   : > { %v919_v52 = vsel %vm782_vm1, %v917_v43, %v918_v50  ;;  %v924_v53 = vsel %vm782_vm1, %v918_v50, 0.0 }
  0xce   : > { %v926_v54 = vpack.c.bf16 %v919_v52, %v919_v52  ;;  %v927_v55 = vpack.c.bf16 %v924_v53, %v924_v53  ;;  %v893_v52 = vld [vmem:[%s3574_s2] sm:$0xf] }
  0xd0   : > { %v969_v57 = vunpack.c.l.b16 %v927_v55  ;;  %v934_v58 = vunpack.c.l.b16 %v926_v54  ;;  %v1224_v55 = vsel %vm1202_vm8, %v893_v52, 0 }
  0xd2   : > { %v970_v59 = vpack.c.b16 %v969_v57, %v969_v57  ;;  %v935_v60 = vpack.c.b16 %v934_v58, %v933_v56 }
  0xd4   : > { %2557 = vmatmul.msk.bf16.vlgmr.msra.gmra.mxu3 %vm948_vm5, %v935_v60  ;;  %v1013_v61 = vrot.slane %v935_v60, 1  ;;  %v1014_v62 = vrot.slane %v970_v59, 1  ;;  %v973_v63 = vshll.u32 %v935_v60, 16  ;;  %v978_v0 = vshll.u32 %v970_v59, 16 }
  0xd5   : > { %v971_v2 = vshrl.u32 %v935_v60, 16 }
  0xd6   : > { %v1015_v1 = vsel %vm850_vm3, %v1013_v61, %v1014_v62  ;;  %v975_v3 = vrot.slane %v973_v63, 1  ;;  %v980_v5 = vrot.slane %v978_v0, 1 }
  0xd7   : > { %2575 = vmatmul.msk.bf16.vlgmr.msrb.gmra.mxu1 %vm948_vm5, %v1015_v1 }
  0xd8   : > { %v976_v4 = vor.u32 %v975_v3, %v971_v2 }
  0xda   : > { %v981_v6 = vsel %vm796_vm4, %v976_v4, %v980_v5 }
  0xdb   : > { %2566 = vmatmul.msk.bf16.vlgmr.msrb.gmra.mxu0 %vm948_vm5, %v981_v6 }
 0x154   : > { %v1040_v11 = vpop.f32.mrf.mxu1 }
 0x157   : > { %v961_v8 = vpop.f32.mrf.mxu3 }
 0x158   : > { %v966_v9 = vadd.f32 %v2750_v7, %v961_v8  ;;  %v1006_v10 = vpop.f32.mrf.mxu0 }
 0x15a   : > { %v1011_v12 = vadd.f32 %v1006_v10, %v966_v9 }
 0x15c   : > { %v1045_v13 = vadd.f32 %v1040_v11, %v1011_v12  ;;  %v1042_v19 = vpop.f32.mrf.mxu1 }
 0x15e   : > { %v1047_v17 = vmul.f32 0.35355338, %v1045_v13  ;;  %v1051_v20 = vpack.c.bf16 %v1045_v13, %v1045_v13 }
 0x15f   : > { %v963_v14 = vpop.f32.mrf.mxu3 }
 0x160   : > { %v967_v15 = vadd.f32 %v2750_v7, %v963_v14  ;;  %v1008_v16 = vpop.f32.mrf.mxu0  ;;  %v1049_v22 = vpack.c.bf16 %v1047_v17, %v1047_v17  ;;  %v1060_v25 = vunpack.c.l.b16 %v1051_v20 }
 0x162   : > { %v1012_v18 = vadd.f32 %v1008_v16, %v967_v15  ;;  %v1055_v28 = vunpack.c.l.b16 %v1049_v22 }
 0x164   : > { %v1046_v21 = vadd.f32 %v1042_v19, %v1012_v18 }
 0x166   : > { %v1048_v23 = vmul.f32 0.35355338, %v1046_v21  ;;  %v1052_v24 = vpack.c.bf16 %v1046_v21, %v1046_v21 }
 0x168   : > { %v1050_v26 = vpack.c.bf16 %v1048_v23, %v1048_v23  ;;  %v1061_v27 = vunpack.c.l.b16 %v1052_v24 }
 0x16a   : > { %v1056_v29 = vunpack.c.l.b16 %v1050_v26  ;;  %v3254_v30 = vpack.c.b16 %v1061_v27, %v1060_v25 }
 0x16c   : > { %1063 = vrot.lane.b32.xlu0 %v3254_v30, %s2996_s26  ;;  %v1057_v31 = vpack.c.b16 %v1056_v29, %v1055_v28 }
 0x1de   : > { %v1064_v32 = vpop.permute.xlu0 %1063 }
 0x1df   : > { %v1070_v33 = vsel %vm1065_vm6, %v1064_v32, 0 }
 0x1e0   : > { %1079 = vmatpush.bf16.xpose.msrb.mxu2 %v1070_v33 }
 0x1e7   : > { %2576 = vmatmul.msk.bf16.vlgmr.msrb.gmra.mxu2 %vm1065_vm6, %v1057_v31 }
 0x26a   : > { %v1081_v34 = vpop.f32.mrf.mxu2 }
 0x26b   : > { %v1087_v35 = vsel %vm1086_vm7, %v1081_v34, -inf }
 0x26c   : > { %1088 = vmax.xlane.f32.xlu0 %v1087_v35 }
 0x272   : > { %v1083_v36 = vpop.f32.mrf.mxu2 }
 0x273   : > { %v1090_v37 = vsel %vm1086_vm7, %v1083_v36, -inf }
 0x274   : > { %1091 = vmax.xlane.f32.xlu1 %v1090_v37 }
 0x2df   : > { %v1089_v38 = vpop.xlane.xlu0 %1088 }
 0x2e0   : > { %v1093_v39 = vsub.f32 %v1081_v34, %v1089_v38 }
 0x2e2   : > { %v1095_v41 = vmul.f32 1.442695, %v1093_v39 }
 0x2e4   : > { %2764 = vpow2.f32 %v1095_v41 }
 0x2e7   : > { %v1092_v42 = vpop.xlane.xlu1 %1091 }
 0x2e8   : > { %v1094_v43 = vsub.f32 %v1083_v36, %v1092_v42 }
 0x2ea   : > { %v2765_v44 = vpop.eup %2764  ;;  %v1097_v45 = vmul.f32 1.442695, %v1094_v43 }
 0x2eb   : > { %v1099_v46 = vsel %vm1086_vm7, %v2765_v44, 0.0 }
 0x2ec   : > { %2766 = vpow2.f32 %v1097_v45  ;;  %1100 = vadd.xlane.f32.xlu1 %v1099_v46 }
 0x2f2   : > { %v2767_v47 = vpop.eup %2766 }
 0x2f3   : > { %v1102_v48 = vsel %vm1086_vm7, %v2767_v47, 0.0 }
 0x2f4   : > { %1103 = vadd.xlane.f32.xlu2 %v1102_v48 }
 0x305   : > { %1133 = vrot.lane.b32.xlu1 %v3254_v30, %s2997_s6 }
 0x30c   : > { %1110 = vrot.lane.b32.xlu2 %v3254_v30, %s2998_s27  ;;  %s3575_s27 = sld [smem:[#allocation19_spill]] }
 0x30d   : > { %1332 = vrot.lane.b32.xlu1 %v3254_v30, %s2999_s7  ;;  %s3010_s7 = smov 100  }
 0x314   : > { %1131 = vrot.lane.b32.xlu2 %v1057_v31, %s3000_s3 }
 0x315   : > { %1330 = vrot.lane.b32.xlu1 %v1057_v31, %s3001_s30 }
 0x31c   : > { %1242 = vrot.lane.b32.xlu2 %v3254_v30, %s3002_s20  ;;  %s3011_s20 = smov 116  }
 0x324   : > { %1240 = vrot.lane.b32.xlu2 %v1057_v31, %s3003_s23 }
 0x35f   : > { %v1101_v50 = vpop.xlane.xlu1 %1100 }
 0x360   : > { %2768 = vrcp.f32 %v1101_v50 }
 0x366   : > { %v2769_v53 = vpop.eup %2768 }
 0x367   : > { %v1104_v51 = vpop.xlane.xlu2 %1103  ;;  %v1107_v56 = vmul.f32 %v2769_v53, %v2765_v44 }
 0x368   : > { %2770 = vrcp.f32 %v1104_v51 }
 0x36e   : > { %v2771_v54 = vpop.eup %2770 }
 0x36f   : > { %v1108_v57 = vmul.f32 %v2771_v54, %v2767_v47  ;;  %v1111_v58 = vpop.permute.xlu2 %1110 }
 0x370   : > { %1123 = vmatpush.bf16.msrb.mxu3 %v1111_v58 }
 0x371   : > { %v1109_v59 = vpack.c.bf16 %v1108_v57, %v1107_v56 }
 0x373   : > { %2577 = vmatmul.msk.bf16.vlgmr.msrb.gmra.mxu3 %vm1086_vm7, %v1109_v59 }
 0x374   : > { %1233 = vmatpush.bf16.msra.mxu3 %v1224_v55 }
 0x377   : > { %v1132_v60 = vpop.permute.xlu2 %1131  ;;  %v1134_v61 = vpop.permute.xlu1 %1133 }
 0x378   : > { %v1139_v62 = vsel %vm1065_vm6, %v1134_v61, 0 }
 0x379   : > { %1148 = vmatpush.bf16.xpose.msra.mxu0 %v1139_v62 }
 0x37f   : > { %v1243_v63 = vpop.permute.xlu2 %1242  ;;  %v1333_v0 = vpop.permute.xlu1 %1332 }
 0x380   : > { %v1248_v1 = vsel %vm1065_vm6, %v1243_v63, 0  ;;  %v1338_v2 = vsel %vm1065_vm6, %v1333_v0, 0  ;;  %2578 = vmatmul.msk.bf16.vlgmr.msra.gmra.mxu0 %vm1065_vm6, %v1132_v60  ;;  %v894_v63 = vld [vmem:[%s3574_s2 + $0x4] sm:$0xf] }
 0x381   : > { %1257 = vmatpush.bf16.xpose.msrb.mxu0 %v1248_v1  ;;  %1347 = vmatpush.bf16.xpose.msrb.mxu3 %v1338_v2  ;;  %v1204_v0 = vsel %vm1202_vm8, %v894_v63, 0 }
 0x382   : > { %1213 = vmatpush.bf16.msra.mxu2 %v1204_v0 }
 0x387   : > { %v1241_v3 = vpop.permute.xlu2 %1240  ;;  %v1331_v13 = vpop.permute.xlu1 %1330 }
 0x390   : > { %2582 = vmatmul.msk.bf16.vlgmr.msrb.gmra.mxu0 %vm1065_vm6, %v1241_v3 }
 0x3f6   : > { %v1125_v4 = vpop.f32.mrf.mxu3 }
 0x3fd   : > { %v1150_v5 = vpop.f32.mrf.mxu0 }
 0x3fe   : > { %v1127_v6 = vpop.f32.mrf.mxu3  ;;  %v1155_v7 = vsel %vm1086_vm7, %v1150_v5, -inf }
 0x3ff   : > { %v1130_v8 = vpack.c.bf16 %v1127_v6, %v1125_v4  ;;  %1156 = vmax.xlane.f32.xlu0 %v1155_v7 }
 0x401   : > { %2581 = vmatmul.msk.bf16.vlgmr.msra.gmra.mxu3 %vm1065_vm6, %v1130_v8 }
 0x405   : > { %v1152_v9 = vpop.f32.mrf.mxu0 }
 0x406   : > { %v1158_v10 = vsel %vm1086_vm7, %v1152_v9, -inf }
 0x407   : > { %1159 = vmax.xlane.f32.xlu2 %v1158_v10 }
 0x40d   : > { %v1259_v11 = vpop.f32.mrf.mxu0 }
 0x40e   : > { %v1264_v12 = vsel %vm1086_vm7, %v1259_v11, -inf }
 0x40f   : > { %1265 = vmax.xlane.f32.xlu1 %v1264_v12 }
 0x411   : > { %2585 = vmatmul.msk.bf16.vlgmr.msrb.gmra.mxu3 %vm1065_vm6, %v1331_v13 }
 0x415   : > { %v1261_v14 = vpop.f32.mrf.mxu0 }
 0x416   : > { %v1267_v15 = vsel %vm1086_vm7, %v1261_v14, -inf }
 0x417   : > { %1268 = vmax.xlane.f32.xlu0 %v1267_v15 }
 0x41f   : > { %1178 = vrot.lane.b32.xlu2 %v3254_v30, %s3004_s29 }
 0x472   : > { %v1157_v16 = vpop.xlane.xlu0 %1156 }
 0x473   : > { %v1161_v17 = vsub.f32 %v1150_v5, %v1157_v16 }
 0x475   : > { %v1163_v18 = vmul.f32 1.442695, %v1161_v17 }
 0x477   : > { %2772 = vpow2.f32 %v1163_v18 }
 0x47a   : > { %v1160_v19 = vpop.xlane.xlu2 %1159 }
 0x47b   : > { %v1162_v20 = vsub.f32 %v1152_v9, %v1160_v19  ;;  %v895_v19 = vld [vmem:[%s3574_s2 + $0x8] sm:$0xf] }
 0x47d   : > { %v2773_v21 = vpop.eup %2772  ;;  %v1165_v22 = vmul.f32 1.442695, %v1162_v20  ;;  %v1312_v20 = vsel %vm1202_vm8, %v895_v19, 0 }
 0x47e   : > { %v1167_v23 = vsel %vm1086_vm7, %v2773_v21, 0.0  ;;  %1321 = vmatpush.bf16.msrb.mxu2 %v1312_v20 }
 0x47f   : > { %2774 = vpow2.f32 %v1165_v22  ;;  %1168 = vadd.xlane.f32.xlu0 %v1167_v23 }
 0x482   : > { %v1179_v24 = vpop.permute.xlu2 %1178  ;;  %v1266_v33 = vpop.xlane.xlu1 %1265 }
 0x483   : > { %1191 = vmatpush.bf16.msra.mxu1 %v1179_v24  ;;  %v1270_v34 = vsub.f32 %v1259_v11, %v1266_v33 }
 0x484   : > { %v3290_v25 = vpop.f32.mrf.mxu3 }
 0x485   : > { %v2775_v26 = vpop.eup %2774  ;;  %v1272_v39 = vmul.f32 1.442695, %v1270_v34 }
 0x486   : > { %v1170_v27 = vsel %vm1086_vm7, %v2775_v26, 0.0 }
 0x487   : > { %1171 = vadd.xlane.f32.xlu0 %v1170_v27 }
 0x48a   : > { %v1269_v28 = vpop.xlane.xlu0 %1268 }
 0x48b   : > { %v1271_v29 = vsub.f32 %v1261_v14, %v1269_v28 }
 0x48c   : > { %v3293_v31 = vpop.f32.mrf.mxu3 }
 0x48d   : > { %v1274_v32 = vmul.f32 1.442695, %v1271_v29 }
 0x48f   : > { %2776 = vpow2.f32 %v1274_v32 }
 0x490   : > { %2778 = vpow2.f32 %v1272_v39 }
 0x494   : > { %v1349_v35 = vpop.f32.mrf.mxu3 }
 0x495   : > { %v2777_v36 = vpop.eup %2776  ;;  %v1354_v37 = vsel %vm1086_vm7, %v1349_v35, -inf }
 0x496   : > { %1355 = vmax.xlane.f32.xlu0 %v1354_v37  ;;  %v1279_v38 = vsel %vm1086_vm7, %v2777_v36, 0.0  ;;  %v2779_v43 = vpop.eup %2778  ;;  %v2751_v37 = vld [vmem:[%s3575_s27] ss:$0 sm:$0xff]  ;;  %s3009_s27 = smov 108  }
 0x497   : > { %1280 = vadd.xlane.f32.xlu1 %v1279_v38  ;;  %v1276_v44 = vsel %vm1086_vm7, %v2779_v43, 0.0 }
 0x49c   : > { %v1351_v41 = vpop.f32.mrf.mxu3 }
 0x49d   : > { %v1357_v42 = vsel %vm1086_vm7, %v1351_v41, -inf }
 0x49e   : > { %1358 = vmax.xlane.f32.xlu0 %v1357_v42 }
 0x4a6   : > { %1277 = vadd.xlane.f32.xlu0 %v1276_v44 }
 0x4f2   : > { %v1169_v45 = vpop.xlane.xlu0 %1168 }
 0x4f3   : > { %2780 = vrcp.f32 %v1169_v45 }
 0x4f9   : > { %v2781_v47 = vpop.eup %2780 }
 0x4fa   : > { %v1172_v46 = vpop.xlane.xlu0 %1171  ;;  %v1175_v50 = vmul.f32 %v2781_v47, %v2773_v21  ;;  %v896_v21 = vld [vmem:[%s3574_s2 + $0xc] sm:$0xf] }
 0x4fb   : > { %2782 = vrcp.f32 %v1172_v46  ;;  %v1402_v22 = vsel %vm1202_vm8, %v896_v21, 0 }
 0x501   : > { %v2783_v48 = vpop.eup %2782 }
 0x502   : > { %v1176_v51 = vmul.f32 %v2783_v48, %v2775_v26 }
 0x504   : > { %v1177_v52 = vpack.c.bf16 %v1176_v51, %v1175_v50 }
 0x506   : > { %2579 = vmatmul.msk.bf16.vlgmr.msra.gmra.mxu1 %vm1086_vm7, %v1177_v52  ;;  %v3007_v52 = vmov 32.0  }
 0x509   : > { %v1356_v53 = vpop.xlane.xlu0 %1355 }
 0x50a   : > { %v1360_v54 = vsub.f32 %v1349_v35, %v1356_v53  ;;  %v1281_v5 = vpop.xlane.xlu1 %1280 }
 0x50c   : > { %v1362_v55 = vmul.f32 1.442695, %v1360_v54 }
 0x50e   : > { %2784 = vpow2.f32 %v1362_v55 }
 0x511   : > { %v1359_v56 = vpop.xlane.xlu0 %1358 }
 0x512   : > { %v1361_v57 = vsub.f32 %v1351_v41, %v1359_v56 }
 0x514   : > { %v2785_v58 = vpop.eup %2784  ;;  %v1364_v59 = vmul.f32 1.442695, %v1361_v57 }
 0x515   : > { %v1366_v60 = vsel %vm1086_vm7, %v2785_v58, 0.0 }
 0x516   : > { %2786 = vpow2.f32 %v1364_v59  ;;  %1367 = vadd.xlane.f32.xlu0 %v1366_v60 }
 0x519   : > { %v1278_v3 = vpop.xlane.xlu0 %1277 }
 0x51a   : > { %2788 = vrcp.f32 %v1278_v3 }
 0x51b   : > { %2790 = vrcp.f32 %v1281_v5  ;;  %v2668_v5 = vld [vmem:[%s3535_s9 + $0x8] sm:$0xff] }
 0x51c   : > { %v2787_v61 = vpop.eup %2786 }
 0x51d   : > { %v1369_v62 = vsel %vm1086_vm7, %v2787_v61, 0.0 }
 0x51e   : > { %1370 = vadd.xlane.f32.xlu1 %v1369_v62 }
 0x520   : > { %v2789_v7 = vpop.eup %2788 }
 0x521   : > { %v2791_v8 = vpop.eup %2790 }
 0x522   : > { %v1285_v10 = vmul.f32 %v2791_v8, %v2777_v36 }
 0x52a   : > { %1287 = vrot.lane.b32.xlu0 %v3254_v30, %s3005_s0 }
 0x537   : > { %1377 = vrot.lane.b32.xlu1 %v3254_v30, %s3006_s24  ;;  %v1284_v30 = vmul.f32 %v2789_v7, %v2779_v43  ;;  %v2667_v7 = vld [vmem:[%s3535_s9] sm:$0xff]  ;;  %s3576_s24 = sld [smem:[#allocation20_spill]] }
 0x539   : > { %v1286_v12 = vpack.c.bf16 %v1285_v10, %v1284_v30 }
 0x53d   : > { %v2752_v21 = vld [vmem:[%s3576_s24] ss:$0 sm:$0xff]  ;;  %s3578_s24 = sld [smem:[#allocation23_spill]] }
 0x583   : > { %v1193_v1 = vpop.f32.mrf.mxu1 }
 0x589   : > { %v1368_v6 = vpop.xlane.xlu0 %1367 }
 0x58b   : > { %v1195_v2 = vpop.f32.mrf.mxu1 }
 0x58c   : > { %v1198_v4 = vpack.c.bf16 %v1195_v2, %v1193_v1 }
 0x58e   : > { %2580 = vmatmul.msk.bf16.vlgmr.msra.gmra.mxu2 %vm1065_vm6, %v1198_v4 }
 0x58f   : > { %1530 = vmatpush.bf16.msra.mxu2 %v2668_v5 }
 0x591   : > { %v1371_v9 = vpop.xlane.xlu1 %1370 }
 0x592   : > { %2792 = vrcp.f32 %v1371_v9 }
 0x593   : > { %2794 = vrcp.f32 %v1368_v6  ;;  %v2672_v6 = vld [vmem:[%s3535_s9 + $0x28] sm:$0xff]  ;;  %1531 = vmatpush.bf16.msra.mxu2 %v2667_v7 }
 0x594   : > { %2796 = vrcp.f32 %v3007_v52 }
 0x598   : > { %v2793_v13 = vpop.eup %2792 }
 0x599   : > { %v2795_v14 = vpop.eup %2794  ;;  %v1375_v15 = vmul.f32 %v2793_v13, %v2787_v61  ;;  %v2671_v13 = vld [vmem:[%s3535_s9 + $0x20] sm:$0xff] }
 0x59a   : > { %v1374_v16 = vmul.f32 %v2795_v14, %v2785_v58  ;;  %v2797_v53 = vpop.eup %2796 }
 0x59b   : > { %v1434_v54 = vmul.f32 32.0, %v2797_v53  ;;  %vm1438_vm9 = vweird.f32 %v2797_v53 }
 0x59c   : > { %v1288_v11 = vpop.permute.xlu0 %1287  ;;  %v1376_v18 = vpack.c.bf16 %v1375_v15, %v1374_v16  ;;  %v2669_v16 = vld [vmem:[%s3535_s9 + $0x10] sm:$0xff] }
 0x59d   : > { %1300 = vmatpush.bf16.msrb.mxu1 %v1288_v11  ;;  %v1435_v55 = vsub.f32 1.0, %v1434_v54 }
 0x5a0   : > { %2583 = vmatmul.msk.bf16.vlgmr.msrb.gmra.mxu1 %vm1086_vm7, %v1286_v12  ;;  %v2670_v12 = vld [vmem:[%s3535_s9 + $0x18] sm:$0xff] }
 0x5a1   : > { %1411 = vmatpush.bf16.msra.mxu1 %v1402_v22  ;;  %1575 = vmatpush.bf16.msra.mxu3 %v2670_v12 }
 0x5a5   : > { %1576 = vmatpush.bf16.msra.mxu3 %v2669_v16 }
 0x5a9   : > { %v1378_v17 = vpop.permute.xlu1 %1377 }
 0x5aa   : > { %1390 = vmatpush.bf16.msra.mxu0 %v1378_v17 }
 0x5ad   : > { %2586 = vmatmul.msk.bf16.vlgmr.msra.gmra.mxu0 %vm1086_vm7, %v1376_v18 }
 0x5ae   : > { %1609 = vmatpush.bf16.msrb.mxu0 %v2672_v6 }
 0x5b2   : > { %1610 = vmatpush.bf16.msrb.mxu0 %v2671_v13 }
 0x611   : > { %v1215_v32 = vpop.f32.mrf.mxu2 }
 0x612   : > { %v1236_v35 = vadd.f32 %v3290_v25, %v1215_v32 }
 0x619   : > { %v1217_v33 = vpop.f32.mrf.mxu2 }
 0x61a   : > { %v1238_v43 = vadd.f32 %v3293_v31, %v1217_v33  ;;  %v1436_v31 = vmul.f32 %v2797_v53, %v1435_v55 }
 0x61c   : > { %v1437_v56 = vadd.f32 %v2797_v53, %v1436_v31 }
 0x61d   : > { %v1302_v23 = vpop.f32.mrf.mxu1 }
 0x625   : > { %v1304_v24 = vpop.f32.mrf.mxu1 }
 0x626   : > { %v1307_v26 = vpack.c.bf16 %v1304_v24, %v1302_v23  ;;  %v2753_v24 = vld [vmem:[%s3534_s8] ss:$0 sm:$0xff] }
 0x628   : > { %2584 = vmatmul.msk.bf16.vlgmr.msrb.gmra.mxu2 %vm1065_vm6, %v1307_v26 }
 0x62a   : > { %v1392_v27 = vpop.f32.mrf.mxu0 }
 0x632   : > { %v1394_v28 = vpop.f32.mrf.mxu0 }
 0x633   : > { %v1397_v29 = vpack.c.bf16 %v1394_v28, %v1392_v27 }
 0x635   : > { %2587 = vmatmul.msk.bf16.vlgmr.msra.gmra.mxu1 %vm1065_vm6, %v1397_v29 }
 0x6ab   : > { %v1323_v34 = vpop.f32.mrf.mxu2 }
 0x6ac   : > { %v1328_v36 = vadd.f32 %v1323_v34, %v1236_v35 }
 0x6b2   : > { %v1413_v38 = vpop.f32.mrf.mxu1 }
 0x6b3   : > { %v1418_v39 = vadd.f32 %v1413_v38, %v1328_v36  ;;  %v1325_v42 = vpop.f32.mrf.mxu2 }
 0x6b4   : > { %v1329_v45 = vadd.f32 %v1325_v42, %v1238_v43 }
 0x6b5   : > { %v1423_v41 = vadd.f32 %v2751_v37, %v1418_v39 }
 0x6b7   : > { %v1425_v44 = vadd.f32 %v1423_v41, %v3234_v40  ;;  %v1439_v40 = vsel %vm1438_vm9, %v2797_v53, %v1437_v56 }
 0x6b9   : > { %v1427_v46 = vsel %vm948_vm5, %v1425_v44, 0.0 }
 0x6ba   : > { %1428 = vadd.xlane.f32.xlu2 %v1427_v46  ;;  %v1415_v47 = vpop.f32.mrf.mxu1 }
 0x6bb   : > { %v1419_v48 = vadd.f32 %v1415_v47, %v1329_v45 }
 0x6bd   : > { %v1424_v25 = vadd.f32 %v2751_v37, %v1419_v48 }
 0x6bf   : > { %v1426_v50 = vadd.f32 %v1424_v25, %v3241_v49 }
 0x6c1   : > { %v1430_v51 = vsel %vm948_vm5, %v1426_v50, 0.0 }
 0x6c2   : > { %1431 = vadd.xlane.f32.xlu0 %v1430_v51 }
 0x72d   : > { %v1429_v57 = vpop.xlane.xlu2 %1428 }
 0x72e   : > { %v1440_v58 = vmul.f32 %v1439_v40, %v1429_v57 }
 0x730   : > { %v1442_v59 = vsub.f32 %v1425_v44, %v1440_v58 }
 0x732   : > { %v1444_v60 = vmul.f32 %v1442_v59, %v1442_v59 }
 0x734   : > { %v1446_v61 = vsel %vm948_vm5, %v1444_v60, 0.0 }
 0x735   : > { %1447 = vadd.xlane.f32.xlu1 %v1446_v61  ;;  %v1432_v49 = vpop.xlane.xlu0 %1431  ;;  %v2754_v61 = vld [vmem:[%s3536_s10] ss:$0 sm:$0xff] }
 0x736   : > { %v1441_v62 = vmul.f32 %v1439_v40, %v1432_v49 }
 0x738   : > { %v1443_v63 = vsub.f32 %v1426_v50, %v1441_v62 }
 0x73a   : > { %v1445_v0 = vmul.f32 %v1443_v63, %v1443_v63 }
 0x73c   : > { %v1449_v1 = vsel %vm948_vm5, %v1445_v0, 0.0 }
 0x73d   : > { %1450 = vadd.xlane.f32.xlu2 %v1449_v1 }
 0x7a8   : > { %v1448_v2 = vpop.xlane.xlu1 %1447 }
 0x7a9   : > { %v1452_v3 = vmul.f32 %v1448_v2, %v1439_v40 }
 0x7ab   : > { %v1454_v4 = vadd.f32 1e-05, %v1452_v3 }
 0x7ad   : > { %2798 = vrsqrt.f32 %v1454_v4  ;;  %vm1462_vm11 = vweird.f32 %v1454_v4 }
 0x7b0   : > { %v1451_v8 = vpop.xlane.xlu2 %1450 }
 0x7b1   : > { %v1453_v30 = vmul.f32 %v1451_v8, %v1439_v40 }
 0x7b3   : > { %v2799_v9 = vpop.eup %2798  ;;  %v1455_v10 = vadd.f32 1e-05, %v1453_v30 }
 0x7b4   : > { %v1457_v11 = vmul.f32 %v2799_v9, %v1454_v4  ;;  %vm1463_vm10 = vweird.f32 %v2799_v9 }
 0x7b5   : > { %2800 = vrsqrt.f32 %v1455_v10  ;;  %vm1464_vm12 = vmor %vm1462_vm11, %vm1463_vm10  ;;  %vm1472_vm14 = vweird.f32 %v1455_v10 }
 0x7b6   : > { %v1458_v14 = vmul.f32 %v2799_v9, %v1457_v11  ;;  %v3008_v11 = vmov 16.0  }
 0x7b7   : > { %2802 = vrcp.f32 %v3008_v11 }
 0x7b8   : > { %v1459_v15 = vmul.f32 0.5, %v1458_v14 }
 0x7ba   : > { %v1460_v17 = vsub.f32 1.5, %v1459_v15 }
 0x7bb   : > { %v2801_v18 = vpop.eup %2800 }
 0x7bc   : > { %v1461_v19 = vmul.f32 %v2799_v9, %v1460_v17  ;;  %v1467_v20 = vmul.f32 %v2801_v18, %v1455_v10  ;;  %vm1473_vm13 = vweird.f32 %v2801_v18 }
 0x7bd   : > { %vm1474_vm15 = vmor %vm1472_vm14, %vm1473_vm13  ;;  %v2803_v12 = vpop.eup %2802 }
 0x7be   : > { %v1465_v22 = vsel %vm1464_vm12, %v2799_v9, %v1461_v19  ;;  %v1468_v23 = vmul.f32 %v2801_v18, %v1467_v20  ;;  %v1628_v13 = vmul.f32 16.0, %v2803_v12 }
 0x7bf   : > { %v1476_v26 = vmul.f32 %v1465_v22, %v1442_v59 }
 0x7c0   : > { %v1469_v27 = vmul.f32 0.5, %v1468_v23  ;;  %v1629_v14 = vsub.f32 1.0, %v1628_v13 }
 0x7c1   : > { %v1481_v28 = vmul.f32 %v2752_v21, %v1476_v26 }
 0x7c2   : > { %v1470_v29 = vsub.f32 1.5, %v1469_v27  ;;  %v1630_v15 = vmul.f32 %v2803_v12, %v1629_v14 }
 0x7c3   : > { %v1486_v32 = vadd.f32 %v2753_v24, %v1481_v28 }
 0x7c4   : > { %v1471_v33 = vmul.f32 %v2801_v18, %v1470_v29  ;;  %v1631_v16 = vadd.f32 %v2803_v12, %v1630_v15 }
 0x7c5   : > { %v1490_v35 = vrot.slane %v1486_v32, 7 }
 0x7c6   : > { %v1475_v34 = vsel %vm1474_vm15, %v2801_v18, %v1471_v33 }
 0x7c7   : > { %v1477_v36 = vmul.f32 %v1475_v34, %v1443_v63  ;;  %v1496_v39 = vsel %vm782_vm1, 0.0, %v1490_v35  ;;  %v2673_v34 = vld [vmem:[%s3539_s13] sm:$0xff] }
 0x7c8   : > { %v1498_v42 = vpack.c.bf16 %v1496_v39, %v1496_v39  ;;  %1740 = vmatpush.bf16.msrb.mxu1 %v2673_v34 }
 0x7c9   : > { %v1482_v37 = vmul.f32 %v2752_v21, %v1477_v36 }
 0x7ca   : > { %v1506_v47 = vunpack.c.l.b16 %v1498_v42 }
 0x7cb   : > { %v1487_v38 = vadd.f32 %v2753_v24, %v1482_v37 }
 0x7cd   : > { %v1491_v41 = vrot.slane %v1487_v38, 7 }
 0x7cf   : > { %v1492_v43 = vsel %vm782_vm1, %v1490_v35, %v1491_v41  ;;  %v1497_v44 = vsel %vm782_vm1, %v1491_v41, 0.0  ;;  %v2675_v41 = vld [vmem:[%s3539_s13 + $0x10] sm:$0xff] }
 0x7d0   : > { %v1499_v45 = vpack.c.bf16 %v1492_v43, %v1492_v43  ;;  %v1500_v46 = vpack.c.bf16 %v1497_v44, %v1497_v44  ;;  %1807 = vmatpush.bf16.msrb.mxu3 %v2675_v41  ;;  %v2674_v44 = vld [vmem:[%s3539_s13 + $0x8] sm:$0xff] }
 0x7d1   : > { %1779 = vmatpush.bf16.msrb.mxu2 %v2674_v44 }
 0x7d2   : > { %v1507_v48 = vunpack.c.l.b16 %v1499_v45  ;;  %v1541_v25 = vunpack.c.l.b16 %v1500_v46 }
 0x7d4   : > { %v1508_v50 = vpack.c.b16 %v1507_v48, %v1506_v47  ;;  %v1542_v51 = vpack.c.b16 %v1541_v25, %v1541_v25  ;;  %v2755_v25 = vld [vmem:[%s3537_s11] ss:$0 sm:$0xff] }
 0x7d6   : > { %2596 = vmatmul.msk.bf16.vlgmr.msra.gmra.mxu2 %vm948_vm5, %v1508_v50  ;;  %v1585_v52 = vrot.slane %v1508_v50, 1  ;;  %v1586_v53 = vrot.slane %v1542_v51, 1  ;;  %v1545_v54 = vshll.u32 %v1508_v50, 16  ;;  %v1550_v55 = vshll.u32 %v1542_v51, 16 }
 0x7d7   : > { %v1543_v56 = vshrl.u32 %v1508_v50, 16 }
 0x7d8   : > { %v1587_v31 = vsel %vm850_vm3, %v1585_v52, %v1586_v53  ;;  %v1547_v40 = vrot.slane %v1545_v54, 1  ;;  %v1552_v58 = vrot.slane %v1550_v55, 1  ;;  %v2756_v52 = vld [vmem:[%s3538_s12] ss:$0 sm:$0xff] }
 0x7d9   : > { %2614 = vmatmul.msk.bf16.vlgmr.msrb.gmra.mxu0 %vm948_vm5, %v1587_v31 }
 0x7da   : > { %v1548_v57 = vor.u32 %v1547_v40, %v1543_v56 }
 0x7dc   : > { %v1553_v59 = vsel %vm796_vm4, %v1548_v57, %v1552_v58 }
 0x7dd   : > { %2605 = vmatmul.msk.bf16.vlgmr.msra.gmra.mxu3 %vm948_vm5, %v1553_v59  ;;  %vm1632_vm5 = vweird.f32 %v2803_v12 }
 0x7de   : > { %v3369_v17 = vsel %vm1632_vm5, %v2803_v12, %v1631_v16 }
 0x856   : > { %v1612_v62 = vpop.f32.mrf.mxu0 }
 0x859   : > { %v1533_v60 = vpop.f32.mrf.mxu2 }
 0x85a   : > { %v1538_v49 = vadd.f32 %v2754_v61, %v1533_v60 }
 0x85e   : > { %v1614_v8 = vpop.f32.mrf.mxu0 }
 0x860   : > { %v1578_v63 = vpop.f32.mrf.mxu3 }
 0x861   : > { %v1583_v0 = vadd.f32 %v1578_v63, %v1538_v49  ;;  %v1535_v2 = vpop.f32.mrf.mxu2 }
 0x862   : > { %v1539_v4 = vadd.f32 %v2754_v61, %v1535_v2 }
 0x863   : > { %v1617_v1 = vadd.f32 %v1612_v62, %v1583_v0 }
 0x865   : > { %v1619_v3 = vmax.f32 %v1617_v1, 0.0 }
 0x867   : > { %v1621_v5 = vsel %vm1086_vm7, %v1619_v3, 0.0 }
 0x868   : > { %v1580_v6 = vpop.f32.mrf.mxu3  ;;  %1622 = vadd.xlane.f32.xlu2 %v1621_v5 }
 0x869   : > { %v1584_v7 = vadd.f32 %v1580_v6, %v1539_v4 }
 0x86b   : > { %v1618_v30 = vadd.f32 %v1614_v8, %v1584_v7 }
 0x86d   : > { %v1620_v9 = vmax.f32 %v1618_v30, 0.0 }
 0x86f   : > { %v1624_v10 = vsel %vm1086_vm7, %v1620_v9, 0.0 }
 0x870   : > { %1625 = vadd.xlane.f32.xlu0 %v1624_v10 }
 0x8db   : > { %v1623_v18 = vpop.xlane.xlu2 %1622 }
 0x8dc   : > { %v1634_v19 = vmul.f32 %v3369_v17, %v1623_v18 }
 0x8de   : > { %v1636_v20 = vsub.f32 %v1619_v3, %v1634_v19 }
 0x8e0   : > { %v1638_v21 = vmul.f32 %v1636_v20, %v1636_v20 }
 0x8e2   : > { %v1640_v22 = vsel %vm1086_vm7, %v1638_v21, 0.0 }
 0x8e3   : > { %1641 = vadd.xlane.f32.xlu2 %v1640_v22  ;;  %v1626_v23 = vpop.xlane.xlu0 %1625 }
 0x8e4   : > { %v1635_v24 = vmul.f32 %v3369_v17, %v1626_v23 }
 0x8e6   : > { %v1637_v26 = vsub.f32 %v1620_v9, %v1635_v24 }
 0x8e8   : > { %v1639_v27 = vmul.f32 %v1637_v26, %v1637_v26 }
 0x8ea   : > { %v1643_v28 = vsel %vm1086_vm7, %v1639_v27, 0.0 }
 0x8eb   : > { %1644 = vadd.xlane.f32.xlu1 %v1643_v28 }
 0x956   : > { %v1642_v29 = vpop.xlane.xlu2 %1641 }
 0x957   : > { %v1646_v32 = vmul.f32 %v1642_v29, %v3369_v17 }
 0x959   : > { %v1648_v33 = vadd.f32 1e-05, %v1646_v32 }
 0x95b   : > { %2804 = vrsqrt.f32 %v1648_v33  ;;  %vm1656_vm9 = vweird.f32 %v1648_v33 }
 0x95e   : > { %v1645_v35 = vpop.xlane.xlu1 %1644 }
 0x95f   : > { %v1647_v36 = vmul.f32 %v1645_v35, %v3369_v17 }
 0x961   : > { %v2805_v37 = vpop.eup %2804  ;;  %v1649_v38 = vadd.f32 1e-05, %v1647_v36 }
 0x962   : > { %v1651_v39 = vmul.f32 %v2805_v37, %v1648_v33  ;;  %vm1657_vm8 = vweird.f32 %v2805_v37 }
 0x963   : > { %2806 = vrsqrt.f32 %v1649_v38  ;;  %vm1658_vm10 = vmor %vm1656_vm9, %vm1657_vm8  ;;  %vm1666_vm12 = vweird.f32 %v1649_v38 }
 0x964   : > { %v1652_v42 = vmul.f32 %v2805_v37, %v1651_v39 }
 0x966   : > { %v1653_v43 = vmul.f32 0.5, %v1652_v42 }
 0x968   : > { %v1654_v45 = vsub.f32 1.5, %v1653_v43 }
 0x969   : > { %v2807_v46 = vpop.eup %2806 }
 0x96a   : > { %v1655_v47 = vmul.f32 %v2805_v37, %v1654_v45  ;;  %v1661_v48 = vmul.f32 %v2807_v46, %v1649_v38  ;;  %vm1667_vm11 = vweird.f32 %v2807_v46 }
 0x96b   : > { %vm1668_vm13 = vmor %vm1666_vm12, %vm1667_vm11 }
 0x96c   : > { %v1659_v50 = vsel %vm1658_vm10, %v2805_v37, %v1655_v47  ;;  %v1662_v51 = vmul.f32 %v2807_v46, %v1661_v48 }
 0x96d   : > { %v1670_v53 = vmul.f32 %v1659_v50, %v1636_v20  ;;  %v2757_v20 = vld [vmem:[%s3540_s14] ss:$0 sm:$0xff] }
 0x96e   : > { %v1663_v54 = vmul.f32 0.5, %v1662_v51 }
 0x96f   : > { %v1675_v55 = vmul.f32 %v2755_v25, %v1670_v53 }
 0x970   : > { %v1664_v31 = vsub.f32 1.5, %v1663_v54 }
 0x971   : > { %v3392_v56 = vadd.f32 %v2756_v52, %v1675_v55 }
 0x972   : > { %v1665_v40 = vmul.f32 %v2807_v46, %v1664_v31 }
 0x973   : > { %v1705_v58 = vrot.slane %v3392_v56, 7 }
 0x974   : > { %v1669_v57 = vsel %vm1668_vm13, %v2807_v46, %v1665_v40 }
 0x975   : > { %v1671_v59 = vmul.f32 %v1669_v57, %v1637_v26  ;;  %v1711_v49 = vsel %vm782_vm1, 0.0, %v1705_v58 }
 0x976   : > { %v1713_v63 = vpack.c.bf16 %v1711_v49, %v1711_v49 }
 0x977   : > { %v1676_v60 = vmul.f32 %v2755_v25, %v1671_v59 }
 0x978   : > { %v1721_v4 = vunpack.c.l.b16 %v1713_v63 }
 0x979   : > { %v3395_v61 = vadd.f32 %v2756_v52, %v1676_v60 }
 0x97b   : > { %v1706_v62 = vrot.slane %v3395_v61, 7 }
 0x97d   : > { %v1707_v0 = vsel %vm782_vm1, %v1705_v58, %v1706_v62  ;;  %v1712_v1 = vsel %vm782_vm1, %v1706_v62, 0.0 }
 0x97e   : > { %v1714_v2 = vpack.c.bf16 %v1707_v0, %v1707_v0  ;;  %v1715_v3 = vpack.c.bf16 %v1712_v1, %v1712_v1 }
 0x980   : > { %v1722_v5 = vunpack.c.l.b16 %v1714_v2  ;;  %v1750_v6 = vunpack.c.l.b16 %v1715_v3 }
 0x982   : > { %v1723_v7 = vpack.c.b16 %v1722_v5, %v1721_v4  ;;  %v1751_v8 = vpack.c.b16 %v1750_v6, %v1750_v6  ;;  %v3431_v4 = vld [vmem:[%s3541_s15] sm:$0xf] }
 0x983   : > { %v1994_v5 = vsel %vm813_vm0, %v3431_v4, 0 }
 0x984   : > { %2619 = vmatmul.msk.bf16.vlgmr.msrb.gmra.mxu1 %vm1086_vm7, %v1723_v7  ;;  %v1788_v30 = vrot.slane %v1723_v7, 1  ;;  %v1789_v9 = vrot.slane %v1751_v8, 1  ;;  %v1754_v10 = vshll.u32 %v1723_v7, 16  ;;  %v1759_v11 = vshll.u32 %v1751_v8, 16 }
 0x985   : > { %v1752_v13 = vshrl.u32 %v1723_v7, 16 }
 0x986   : > { %v1790_v12 = vsel %vm850_vm3, %v1788_v30, %v1789_v9  ;;  %v1756_v14 = vrot.slane %v1754_v10, 1  ;;  %v1761_v16 = vrot.slane %v1759_v11, 1 }
 0x987   : > { %2629 = vmatmul.msk.bf16.vlgmr.msrb.gmra.mxu3 %vm1086_vm7, %v1790_v12 }
 0x988   : > { %v1757_v15 = vor.u32 %v1756_v14, %v1752_v13 }
 0x98a   : > { %v1762_v18 = vsel %vm796_vm4, %v1757_v15, %v1761_v16 }
 0x98b   : > { %2624 = vmatmul.msk.bf16.vlgmr.msrb.gmra.mxu2 %vm1086_vm7, %v1762_v18 }
 0xa01   : > { %v1742_v19 = vpop.f32.mrf.mxu1 }
 0xa02   : > { %v1747_v23 = vadd.f32 %v2757_v20, %v1742_v19 }
 0xa09   : > { %v1744_v26 = vpop.f32.mrf.mxu1 }
 0xa0a   : > { %v1809_v21 = vpop.f32.mrf.mxu3  ;;  %v1748_v27 = vadd.f32 %v2757_v20, %v1744_v26 }
 0xa0e   : > { %v1781_v22 = vpop.f32.mrf.mxu2 }
 0xa0f   : > { %v1786_v24 = vadd.f32 %v1781_v22, %v1747_v23 }
 0xa11   : > { %v1814_v28 = vadd.f32 %v1809_v21, %v1786_v24 }
 0xa12   : > { %v1811_v33 = vpop.f32.mrf.mxu3 }
 0xa13   : > { %v1820_v34 = vpack.c.bf16 %v1814_v28, %v1814_v28  ;;  %v1816_v42 = vmul.f32 0.5, %v1814_v28 }
 0xa15   : > { %v1829_v37 = vunpack.c.l.b16 %v1820_v34  ;;  %v1818_v44 = vpack.c.bf16 %v1816_v42, %v1816_v42 }
 0xa16   : > { %v1783_v29 = vpop.f32.mrf.mxu2 }
 0xa17   : > { %v1787_v32 = vadd.f32 %v1783_v29, %v1748_v27  ;;  %v1824_v46 = vunpack.c.l.b16 %v1818_v44 }
 0xa19   : > { %v1815_v35 = vadd.f32 %v1811_v33, %v1787_v32 }
 0xa1b   : > { %v1821_v36 = vpack.c.bf16 %v1815_v35, %v1815_v35  ;;  %v1817_v41 = vmul.f32 0.5, %v1815_v35 }
 0xa1d   : > { %v1830_v38 = vunpack.c.l.b16 %v1821_v36  ;;  %v1819_v43 = vpack.c.bf16 %v1817_v41, %v1817_v41 }
 0xa1f   : > { %v3409_v39 = vpack.c.b16 %v1830_v38, %v1829_v37  ;;  %v1825_v45 = vunpack.c.l.b16 %v1819_v43 }
 0xa21   : > { %1832 = vrot.lane.b32.xlu0 %v3409_v39, %s3003_s23  ;;  %v1826_v47 = vpack.c.b16 %v1825_v45, %v1824_v46 }
 0xa29   : > { %1900 = vrot.lane.b32.xlu0 %v3409_v39, %s3009_s27  ;;  %s771_s27 = scalar_lea.vmem %s3578_s24, %s2659_s18 }
 0xa31   : > { %2012 = vrot.lane.b32.xlu0 %v3409_v39, %s3001_s30  ;;  %s3012_s30 = smov 124  }
 0xa39   : > { %2102 = vrot.lane.b32.xlu0 %v3409_v39, %s3010_s7 }
 0xa41   : > { %2100 = vrot.lane.b32.xlu0 %v1826_v47, %s3011_s20 }
 0xa93   : > { %v1833_v48 = vpop.permute.xlu0 %1832 }
 0xa94   : > { %v1838_v25 = vsel %vm809_vm2, %v1833_v48, 0 }
 0xa95   : > { %1847 = vmatpush.bf16.xpose.msra.mxu0 %v1838_v25 }
 0xa9b   : > { %v1901_v50 = vpop.permute.xlu0 %1900 }
 0xa9c   : > { %v1906_v51 = vsel %vm809_vm2, %v1901_v50, 0  ;;  %2630 = vmatmul.msk.bf16.vlgmr.msra.gmra.mxu0 %vm809_vm2, %v1826_v47 }
 0xa9d   : > { %1915 = vmatpush.bf16.xpose.msra.mxu2 %v1906_v51 }
 0xaa3   : > { %v2013_v52 = vpop.permute.xlu0 %2012 }
 0xaa4   : > { %v2018_v53 = vsel %vm809_vm2, %v2013_v52, 0 }
 0xaa5   : > { %2027 = vmatpush.bf16.xpose.msrb.mxu2 %v2018_v53 }
 0xaab   : > { %v2103_v11 = vpop.permute.xlu0 %2102 }
 0xaac   : > { %v2108_v13 = vsel %vm809_vm2, %v2103_v11, 0 }
 0xab3   : > { %v2101_v22 = vpop.permute.xlu0 %2100 }
 0xb19   : > { %v1849_v54 = vpop.f32.mrf.mxu0 }
 0xb1a   : > { %v1854_v55 = vsel %vm1086_vm7, %v1849_v54, -inf }
 0xb1b   : > { %1855 = vmax.xlane.f32.xlu2 %v1854_v55 }
 0xb21   : > { %v1851_v31 = vpop.f32.mrf.mxu0 }
 0xb22   : > { %v1857_v40 = vsel %vm1086_vm7, %v1851_v31, -inf }
 0xb23   : > { %1858 = vmax.xlane.f32.xlu1 %v1857_v40 }
 0xb8e   : > { %v1856_v57 = vpop.xlane.xlu2 %1855 }
 0xb8f   : > { %v1860_v58 = vsub.f32 %v1849_v54, %v1856_v57 }
 0xb91   : > { %v1862_v59 = vmul.f32 1.442695, %v1860_v58 }
 0xb93   : > { %2808 = vpow2.f32 %v1862_v59 }
 0xb96   : > { %v1859_v60 = vpop.xlane.xlu1 %1858 }
 0xb97   : > { %v1861_v49 = vsub.f32 %v1851_v31, %v1859_v60 }
 0xb99   : > { %v2809_v62 = vpop.eup %2808  ;;  %v1864_v63 = vmul.f32 1.442695, %v1861_v49 }
 0xb9a   : > { %v1866_v0 = vsel %vm1086_vm7, %v2809_v62, 0.0 }
 0xb9b   : > { %2810 = vpow2.f32 %v1864_v63  ;;  %1867 = vadd.xlane.f32.xlu2 %v1866_v0 }
 0xba1   : > { %v2811_v1 = vpop.eup %2810 }
 0xba2   : > { %v1869_v2 = vsel %vm1086_vm7, %v2811_v1, 0.0 }
 0xba3   : > { %1870 = vadd.xlane.f32.xlu1 %v1869_v2 }
 0xbb3   : > { %1877 = vrot.lane.b32.xlu2 %v3409_v39, %s2996_s26  ;;  %s3013_s26 = smov 92  }
 0xbbb   : > { %2010 = vrot.lane.b32.xlu2 %v1826_v47, %s3000_s3 }
 0xbbc   : > { %1898 = vrot.lane.b32.xlu1 %v1826_v47, %s3012_s30 }
 0xc0e   : > { %v1868_v3 = vpop.xlane.xlu2 %1867 }
 0xc0f   : > { %2812 = vrcp.f32 %v1868_v3 }
 0xc15   : > { %v2813_v8 = vpop.eup %2812 }
 0xc16   : > { %v1878_v6 = vpop.permute.xlu2 %1877  ;;  %v1871_v7 = vpop.xlane.xlu1 %1870  ;;  %v1874_v9 = vmul.f32 %v2813_v8, %v2809_v62 }
 0xc17   : > { %2814 = vrcp.f32 %v1871_v7  ;;  %1890 = vmatpush.bf16.msra.mxu1 %v1878_v6 }
 0xc1b   : > { %2003 = vmatpush.bf16.msrb.mxu1 %v1994_v5 }
 0xc1d   : > { %v2815_v30 = vpop.eup %2814 }
 0xc1e   : > { %v1875_v10 = vmul.f32 %v2815_v30, %v2811_v1  ;;  %v2011_v15 = vpop.permute.xlu2 %2010 }
 0xc20   : > { %v1876_v12 = vpack.c.bf16 %v1875_v10, %v1874_v9 }
 0xc22   : > { %2631 = vmatmul.msk.bf16.vlgmr.msra.gmra.mxu1 %vm1086_vm7, %v1876_v12 }
 0xc23   : > { %2117 = vmatpush.bf16.xpose.msra.mxu1 %v2108_v13 }
 0xc2e   : > { %v1899_v14 = vpop.permute.xlu1 %1898 }
 0xc2f   : > { %2632 = vmatmul.msk.bf16.vlgmr.msra.gmra.mxu2 %vm809_vm2, %v1899_v14  ;;  %v1967_v14 = vunpack.c.l.b16 %v3431_v4 }
 0xc3f   : > { %2636 = vmatmul.msk.bf16.vlgmr.msrb.gmra.mxu2 %vm809_vm2, %v2011_v15 }
 0xc9f   : > { %v1892_v16 = vpop.f32.mrf.mxu1 }
 0xca7   : > { %v1894_v18 = vpop.f32.mrf.mxu1 }
 0xca8   : > { %v1897_v19 = vpack.c.bf16 %v1894_v18, %v1892_v16  ;;  %v1968_v16 = vpack.c.b16 %v1967_v14, %v1967_v14 }
 0xcaa   : > { %2635 = vmatmul.msk.bf16.vlgmr.msrb.gmra.mxu1 %vm809_vm2, %v1897_v19  ;;  %v1969_v19 = vrot.slane %v1968_v16, 2 }
 0xcb2   : > { %v1917_v20 = vpop.f32.mrf.mxu2 }
 0xcb3   : > { %v1922_v21 = vsel %vm1086_vm7, %v1917_v20, -inf }
 0xcb4   : > { %1923 = vmax.xlane.f32.xlu1 %v1922_v21 }
 0xcba   : > { %v1919_v23 = vpop.f32.mrf.mxu2  ;;  %2639 = vmatmul.msk.bf16.vlgmr.msra.gmra.mxu1 %vm809_vm2, %v2101_v22 }
 0xcbb   : > { %v1925_v24 = vsel %vm1086_vm7, %v1919_v23, -inf }
 0xcbc   : > { %1926 = vmax.xlane.f32.xlu2 %v1925_v24 }
 0xcc2   : > { %v2029_v26 = vpop.f32.mrf.mxu2 }
 0xcc3   : > { %v2034_v27 = vsel %vm1086_vm7, %v2029_v26, -inf }
 0xcc4   : > { %2035 = vmax.xlane.f32.xlu2 %v2034_v27 }
 0xcca   : > { %v2031_v45 = vpop.f32.mrf.mxu2 }
 0xccb   : > { %v2037_v25 = vsel %vm1086_vm7, %v2031_v45, -inf }
 0xd27   : > { %v3444_v28 = vpop.f32.mrf.mxu1  ;;  %v1924_v35 = vpop.xlane.xlu1 %1923 }
 0xd28   : > { %v1928_v36 = vsub.f32 %v1917_v20, %v1924_v35  ;;  %v1974_v20 = vsel %vm813_vm0, %v1969_v19, 0 }
 0xd29   : > { %1983 = vmatpush.bf16.msrb.mxu0 %v1974_v20 }
 0xd2a   : > { %v1930_v42 = vmul.f32 1.442695, %v1928_v36 }
 0xd2f   : > { %v3446_v29 = vpop.f32.mrf.mxu1  ;;  %v1927_v32 = vpop.xlane.xlu2 %1926 }
 0xd30   : > { %v1929_v33 = vsub.f32 %v1919_v23, %v1927_v32 }
 0xd32   : > { %v1932_v34 = vmul.f32 1.442695, %v1929_v33 }
 0xd34   : > { %2816 = vpow2.f32 %v1932_v34 }
 0xd35   : > { %2818 = vpow2.f32 %v1930_v42  ;;  %v1690_v42 = vld [vmem:[%s3541_s15 + $0x4] sm:$0xf] }
 0xd37   : > { %v2119_v37 = vpop.f32.mrf.mxu1  ;;  %v2036_v44 = vpop.xlane.xlu2 %2035 }
 0xd38   : > { %v2124_v38 = vsel %vm1086_vm7, %v2119_v37, -inf  ;;  %v2040_v46 = vsub.f32 %v2029_v26, %v2036_v44 }
 0xd39   : > { %2125 = vmax.xlane.f32.xlu0 %v2124_v38 }
 0xd3a   : > { %v2817_v41 = vpop.eup %2816  ;;  %v2042_v50 = vmul.f32 1.442695, %v2040_v46  ;;  %v2082_v46 = vsel %vm813_vm0, %v1690_v42, 0 }
 0xd3b   : > { %v1937_v43 = vsel %vm1086_vm7, %v2817_v41, 0.0  ;;  %v2819_v51 = vpop.eup %2818  ;;  %2091 = vmatpush.bf16.msra.mxu0 %v2082_v46 }
 0xd3c   : > { %1938 = vadd.xlane.f32.xlu2 %v1937_v43  ;;  %2820 = vpow2.f32 %v2042_v50  ;;  %v1934_v52 = vsel %vm1086_vm7, %v2819_v51, 0.0  ;;  %v2169_v43 = vunpack.c.l.b16 %v1690_v42 }
 0xd3e   : > { %v2170_v44 = vpack.c.b16 %v2169_v43, %v2169_v43 }
 0xd3f   : > { %v2121_v47 = vpop.f32.mrf.mxu1 }
 0xd40   : > { %v2127_v48 = vsel %vm1086_vm7, %v2121_v47, -inf }
 0xd41   : > { %2128 = vmax.xlane.f32.xlu1 %v2127_v48  ;;  %2038 = vmax.xlane.f32.xlu0 %v2037_v25 }
 0xd42   : > { %v2821_v53 = vpop.eup %2820 }
 0xd43   : > { %v2046_v54 = vsel %vm1086_vm7, %v2821_v53, 0.0 }
 0xd49   : > { %1935 = vadd.xlane.f32.xlu1 %v1934_v52 }
 0xd51   : > { %2047 = vadd.xlane.f32.xlu1 %v2046_v54 }
 0xd55   : > { %1945 = vrot.lane.b32.xlu0 %v3409_v39, %s3013_s26 }
 0xd5d   : > { %2057 = vrot.lane.b32.xlu0 %v3409_v39, %s2997_s6  ;;  %s3014_s6 = smov 84  }
 0xdac   : > { %v2126_v55 = vpop.xlane.xlu0 %2125 }
 0xdad   : > { %v2130_v31 = vsub.f32 %v2119_v37, %v2126_v55 }
 0xdaf   : > { %v2132_v40 = vmul.f32 1.442695, %v2130_v31  ;;  %v1939_v0 = vpop.xlane.xlu2 %1938 }
 0xdb1   : > { %2822 = vpow2.f32 %v2132_v40 }
 0xdb4   : > { %v2129_v57 = vpop.xlane.xlu1 %2128  ;;  %v2039_v58 = vpop.xlane.xlu0 %2038 }
 0xdb5   : > { %v2131_v59 = vsub.f32 %v2121_v47, %v2129_v57  ;;  %v2041_v62 = vsub.f32 %v2031_v45, %v2039_v58  ;;  %v2171_v45 = vrot.slane %v2170_v44, 2  ;;  %v2758_v58 = vld [vmem:[%s3542_s16] ss:$0 sm:$0xff] }
 0xdb7   : > { %v2823_v60 = vpop.eup %2822  ;;  %v2134_v49 = vmul.f32 1.442695, %v2131_v59  ;;  %v2044_v1 = vmul.f32 1.442695, %v2041_v62  ;;  %v2176_v47 = vsel %vm813_vm0, %v2171_v45, 0 }
 0xdb8   : > { %v2136_v63 = vsel %vm1086_vm7, %v2823_v60, 0.0 }
 0xdb9   : > { %2824 = vpow2.f32 %v2134_v49  ;;  %2137 = vadd.xlane.f32.xlu1 %v2136_v63 }
 0xdbc   : > { %v1936_v2 = vpop.xlane.xlu1 %1935 }
 0xdbd   : > { %2826 = vrcp.f32 %v1936_v2 }
 0xdbe   : > { %2828 = vrcp.f32 %v1939_v0 }
 0xdbf   : > { %v2825_v3 = vpop.eup %2824  ;;  %2830 = vpow2.f32 %v2044_v1 }
 0xdc0   : > { %v2139_v5 = vsel %vm1086_vm7, %v2825_v3, 0.0 }
 0xdc1   : > { %2140 = vadd.xlane.f32.xlu2 %v2139_v5 }
 0xdc3   : > { %v2827_v6 = vpop.eup %2826 }
 0xdc4   : > { %v2829_v7 = vpop.eup %2828  ;;  %v1942_v30 = vmul.f32 %v2827_v6, %v2819_v51  ;;  %v2048_v15 = vpop.xlane.xlu1 %2047 }
 0xdc5   : > { %v2831_v8 = vpop.eup %2830  ;;  %v1943_v9 = vmul.f32 %v2829_v7, %v2817_v41 }
 0xdc6   : > { %v2049_v11 = vsel %vm1086_vm7, %v2831_v8, 0.0 }
 0xdc7   : > { %v1946_v10 = vpop.permute.xlu0 %1945  ;;  %v1944_v12 = vpack.c.bf16 %v1943_v9, %v1942_v30 }
 0xdc8   : > { %1958 = vmatpush.bf16.msra.mxu3 %v1946_v10 }
 0xdc9   : > { %2050 = vadd.xlane.f32.xlu2 %v2049_v11 }
 0xdcb   : > { %2633 = vmatmul.msk.bf16.vlgmr.msra.gmra.mxu3 %vm1086_vm7, %v1944_v12 }
 0xdcf   : > { %v2058_v13 = vpop.permute.xlu0 %2057 }
 0xdd0   : > { %2070 = vmatpush.bf16.msrb.mxu3 %v2058_v13 }
 0xdd2   : > { %2147 = vrot.lane.b32.xlu1 %v3409_v39, %s3014_s6 }
 0xdd4   : > { %2185 = vmatpush.bf16.msra.mxu3 %v2176_v47 }
 0xe2c   : > { %v2138_v21 = vpop.xlane.xlu1 %2137 }
 0xe34   : > { %v2141_v18 = vpop.xlane.xlu2 %2140 }
 0xe35   : > { %2832 = vrcp.f32 %v2141_v18  ;;  %v2676_v18 = vld [vmem:[%s3545_s19] sm:$0xff] }
 0xe36   : > { %2834 = vrcp.f32 %v2048_v15 }
 0xe37   : > { %2836 = vrcp.f32 %v2138_v21 }
 0xe3b   : > { %v2833_v23 = vpop.eup %2832 }
 0xe3c   : > { %v2051_v22 = vpop.xlane.xlu2 %2050  ;;  %v2835_v24 = vpop.eup %2834  ;;  %v2145_v27 = vmul.f32 %v2833_v23, %v2825_v3 }
 0xe3d   : > { %2838 = vrcp.f32 %v2051_v22  ;;  %v2837_v26 = vpop.eup %2836  ;;  %v2054_v32 = vmul.f32 %v2835_v24, %v2821_v53  ;;  %v2678_v24 = vld [vmem:[%s3545_s19 + $0x10] sm:$0xff] }
 0xe3e   : > { %v2144_v4 = vmul.f32 %v2837_v26, %v2823_v60 }
 0xe40   : > { %v2146_v35 = vpack.c.bf16 %v2145_v27, %v2144_v4 }
 0xe43   : > { %v2839_v39 = vpop.eup %2838 }
 0xe44   : > { %v2055_v33 = vmul.f32 %v2839_v39, %v2831_v8  ;;  %v2148_v34 = vpop.permute.xlu1 %2147  ;;  %v2677_v39 = vld [vmem:[%s3545_s19 + $0x8] sm:$0xff] }
 0xe45   : > { %2160 = vmatpush.bf16.msra.mxu2 %v2148_v34  ;;  %2331 = vmatpush.bf16.msrb.mxu1 %v2677_v39  ;;  %v2759_v34 = vld [vmem:[%s3543_s17] ss:$0 sm:$0xff] }
 0xe46   : > { %v2056_v36 = vpack.c.bf16 %v2055_v33, %v2054_v32 }
 0xe48   : > { %2637 = vmatmul.msk.bf16.vlgmr.msrb.gmra.mxu3 %vm1086_vm7, %v2056_v36  ;;  %2640 = vmatmul.msk.bf16.vlgmr.msra.gmra.mxu2 %vm1086_vm7, %v2146_v35 }
 0xe49   : > { %2359 = vmatpush.bf16.msrb.mxu2 %v2678_v24 }
 0xe4e   : > { %v1960_v37 = vpop.f32.mrf.mxu3 }
 0xe56   : > { %v1962_v38 = vpop.f32.mrf.mxu3 }
 0xe57   : > { %v1965_v41 = vpack.c.bf16 %v1962_v38, %v1960_v37  ;;  %v2760_v37 = vld [vmem:[%s3577_s1] ss:$0 sm:$0xff] }
 0xe59   : > { %2634 = vmatmul.msk.bf16.vlgmr.msrb.gmra.mxu0 %vm809_vm2, %v1965_v41 }
 0xe5a   : > { %2292 = vmatpush.bf16.msrb.mxu0 %v2676_v18 }
 0xecb   : > { %v2072_v48 = vpop.f32.mrf.mxu3  ;;  %v2162_v25 = vpop.f32.mrf.mxu2 }
 0xed3   : > { %v2074_v50 = vpop.f32.mrf.mxu3  ;;  %v2164_v51 = vpop.f32.mrf.mxu2 }
 0xed4   : > { %v2077_v52 = vpack.c.bf16 %v2074_v50, %v2072_v48  ;;  %v2167_v53 = vpack.c.bf16 %v2164_v51, %v2162_v25 }
 0xed6   : > { %2638 = vmatmul.msk.bf16.vlgmr.msra.gmra.mxu0 %vm809_vm2, %v2077_v52  ;;  %2641 = vmatmul.msk.bf16.vlgmr.msra.gmra.mxu3 %vm809_vm2, %v2167_v53  ;;  %v1985_v54 = vpop.f32.mrf.mxu0 }
 0xed7   : > { %v2006_v40 = vadd.f32 %v3444_v28, %v1985_v54 }
 0xede   : > { %v1987_v55 = vpop.f32.mrf.mxu0 }
 0xedf   : > { %v2008_v63 = vadd.f32 %v3446_v29, %v1987_v55 }
 0xf53   : > { %v2093_v31 = vpop.f32.mrf.mxu0 }
 0xf54   : > { %v2098_v57 = vadd.f32 %v2093_v31, %v2006_v40 }
 0xf59   : > { %v2187_v59 = vpop.f32.mrf.mxu3 }
 0xf5a   : > { %v2192_v60 = vadd.f32 %v2187_v59, %v2098_v57 }
 0xf5b   : > { %v2095_v62 = vpop.f32.mrf.mxu0 }
 0xf5c   : > { %v2197_v49 = vadd.f32 %v2758_v58, %v2192_v60  ;;  %v2099_v1 = vadd.f32 %v2095_v62, %v2008_v63 }
 0xf5e   : > { %v2199_v0 = vadd.f32 %v2197_v49, %v3392_v56 }
 0xf60   : > { %v2201_v2 = vsel %vm1086_vm7, %v2199_v0, 0.0 }
 0xf61   : > { %v2189_v3 = vpop.f32.mrf.mxu3  ;;  %2202 = vadd.xlane.f32.xlu2 %v2201_v2 }
 0xf62   : > { %v2193_v5 = vadd.f32 %v2189_v3, %v2099_v1 }
 0xf64   : > { %v2198_v28 = vadd.f32 %v2758_v58, %v2193_v5 }
 0xf66   : > { %v2200_v6 = vadd.f32 %v2198_v28, %v3395_v61 }
 0xf68   : > { %v2204_v7 = vsel %vm1086_vm7, %v2200_v6, 0.0 }
 0xf69   : > { %2205 = vadd.xlane.f32.xlu0 %v2204_v7 }
 0xfd4   : > { %v2203_v8 = vpop.xlane.xlu2 %2202 }
 0xfd5   : > { %v2207_v30 = vmul.f32 %v2203_v8, %v3369_v17 }
 0xfd7   : > { %v2209_v9 = vsub.f32 %v2199_v0, %v2207_v30  ;;  %v2761_v30 = vld [vmem:[#allocation4] ss:$0 sm:$0xff] }
 0xfd9   : > { %v2211_v10 = vmul.f32 %v2209_v9, %v2209_v9 }
 0xfdb   : > { %v2213_v29 = vsel %vm1086_vm7, %v2211_v10, 0.0 }
 0xfdc   : > { %2214 = vadd.xlane.f32.xlu2 %v2213_v29  ;;  %v2206_v56 = vpop.xlane.xlu0 %2205 }
 0xfdd   : > { %v2208_v11 = vmul.f32 %v2206_v56, %v3369_v17 }
 0xfdf   : > { %v2210_v12 = vsub.f32 %v2200_v6, %v2208_v11 }
 0xfe1   : > { %v2212_v13 = vmul.f32 %v2210_v12, %v2210_v12 }
 0xfe3   : > { %v2216_v14 = vsel %vm1086_vm7, %v2212_v13, 0.0 }
 0xfe4   : > { %2217 = vadd.xlane.f32.xlu2 %v2216_v14 }
0x104f   : > { %v2215_v61 = vpop.xlane.xlu2 %2214 }
0x1050   : > { %v2219_v15 = vmul.f32 %v2215_v61, %v3369_v17 }
0x1052   : > { %v2221_v16 = vadd.f32 1e-05, %v2219_v15 }
0x1054   : > { %2840 = vrsqrt.f32 %v2221_v16  ;;  %vm2229_vm2 = vweird.f32 %v2221_v16 }
0x1057   : > { %v2218_v19 = vpop.xlane.xlu2 %2217 }
0x1058   : > { %v2220_v20 = vmul.f32 %v2218_v19, %v3369_v17 }
0x105a   : > { %v2841_v21 = vpop.eup %2840  ;;  %v2222_v22 = vadd.f32 1e-05, %v2220_v20 }
0x105b   : > { %v2224_v23 = vmul.f32 %v2841_v21, %v2221_v16  ;;  %vm2230_vm0 = vweird.f32 %v2841_v21 }
0x105c   : > { %2842 = vrsqrt.f32 %v2222_v22  ;;  %vm2231_vm14 = vmor %vm2229_vm2, %vm2230_vm0  ;;  %vm2239_vm5 = vweird.f32 %v2222_v22 }
0x105d   : > { %v2225_v26 = vmul.f32 %v2841_v21, %v2224_v23 }
0x105f   : > { %v2226_v27 = vmul.f32 0.5, %v2225_v26 }
0x1061   : > { %v2227_v32 = vsub.f32 1.5, %v2226_v27 }
0x1062   : > { %v2843_v4 = vpop.eup %2842 }
0x1063   : > { %v2228_v17 = vmul.f32 %v2841_v21, %v2227_v32  ;;  %v2234_v33 = vmul.f32 %v2843_v4, %v2222_v22  ;;  %vm2240_vm15 = vweird.f32 %v2843_v4  ;;  %v3015_v22 = vmov 8.0  }
0x1064   : > { %vm2241_vm8 = vmor %vm2239_vm5, %vm2240_vm15  ;;  %2844 = vrcp.f32 %v3015_v22 }
0x1065   : > { %v2232_v35 = vsel %vm2231_vm14, %v2841_v21, %v2228_v17  ;;  %v2235_v36 = vmul.f32 %v2843_v4, %v2234_v33 }
0x1066   : > { %v2243_v38 = vmul.f32 %v2232_v35, %v2209_v9 }
0x1067   : > { %v2236_v41 = vmul.f32 0.5, %v2235_v36 }
0x1068   : > { %v2248_v42 = vmul.f32 %v2759_v34, %v2243_v38 }
0x1069   : > { %v2237_v43 = vsub.f32 1.5, %v2236_v41 }
0x106a   : > { %v2253_v44 = vadd.f32 %v2760_v37, %v2248_v42  ;;  %v2845_v23 = vpop.eup %2844 }
0x106b   : > { %v2238_v45 = vmul.f32 %v2843_v4, %v2237_v43  ;;  %v2377_v24 = vmul.f32 8.0, %v2845_v23 }
0x106c   : > { %v2257_v47 = vrot.slane %v2253_v44, 7 }
0x106d   : > { %v2242_v46 = vsel %vm2241_vm8, %v2843_v4, %v2238_v45  ;;  %v2378_v26 = vsub.f32 1.0, %v2377_v24 }
0x106e   : > { %v2244_v48 = vmul.f32 %v2242_v46, %v2210_v12  ;;  %v2263_v51 = vsel %vm782_vm1, 0.0, %v2257_v47 }
0x106f   : > { %v2265_v53 = vpack.c.bf16 %v2263_v51, %v2263_v51  ;;  %v2379_v27 = vmul.f32 %v2845_v23, %v2378_v26 }
0x1070   : > { %v2249_v25 = vmul.f32 %v2759_v34, %v2244_v48 }
0x1071   : > { %v2273_v57 = vunpack.c.l.b16 %v2265_v53  ;;  %v2380_v39 = vadd.f32 %v2845_v23, %v2379_v27 }
0x1072   : > { %v2254_v50 = vadd.f32 %v2760_v37, %v2249_v25 }
0x1074   : > { %v2258_v52 = vrot.slane %v2254_v50, 7 }
0x1076   : > { %v2259_v54 = vsel %vm782_vm1, %v2257_v47, %v2258_v52  ;;  %v2264_v55 = vsel %vm782_vm1, %v2258_v52, 0.0  ;;  %vm2381_vm1 = vweird.f32 %v2845_v23 }
0x1077   : > { %v2266_v31 = vpack.c.bf16 %v2259_v54, %v2259_v54  ;;  %v2267_v40 = vpack.c.bf16 %v2264_v55, %v2264_v55  ;;  %v2382_v32 = vsel %vm2381_vm1, %v2845_v23, %v2380_v39 }
0x1079   : > { %v2274_v58 = vunpack.c.l.b16 %v2266_v31  ;;  %v2302_v59 = vunpack.c.l.b16 %v2267_v40  ;;  %v2762_v40 = vld [vmem:[#allocation6] ss:$0 sm:$0xff] }
0x107b   : > { %v2275_v60 = vpack.c.b16 %v2274_v58, %v2273_v57  ;;  %v2303_v49 = vpack.c.b16 %v2302_v59, %v2302_v59  ;;  %v2763_v59 = vld [vmem:[#allocation7] ss:$0 sm:$0xff] }
0x107d   : > { %2646 = vmatmul.msk.bf16.vlgmr.msrb.gmra.mxu0 %vm1086_vm7, %v2275_v60  ;;  %v2340_v62 = vrot.slane %v2275_v60, 1  ;;  %v2341_v63 = vrot.slane %v2303_v49, 1  ;;  %v2306_v0 = vshll.u32 %v2275_v60, 16  ;;  %v2311_v1 = vshll.u32 %v2303_v49, 16 }
0x107e   : > { %v2304_v3 = vshrl.u32 %v2275_v60, 16 }
0x107f   : > { %v2342_v2 = vsel %vm850_vm3, %v2340_v62, %v2341_v63  ;;  %v2308_v5 = vrot.slane %v2306_v0, 1  ;;  %v2313_v6 = vrot.slane %v2311_v1, 1 }
0x1080   : > { %2656 = vmatmul.msk.bf16.vlgmr.msrb.gmra.mxu2 %vm1086_vm7, %v2342_v2 }
0x1081   : > { %v2309_v28 = vor.u32 %v2308_v5, %v2304_v3 }
0x1083   : > { %v2314_v7 = vsel %vm796_vm4, %v2309_v28, %v2313_v6 }
0x1084   : > { %2651 = vmatmul.msk.bf16.vlgmr.msrb.gmra.mxu1 %vm1086_vm7, %v2314_v7 }
0x10fa   : > { %v2294_v8 = vpop.f32.mrf.mxu0 }
0x10fb   : > { %v2299_v9 = vadd.f32 %v2761_v30, %v2294_v8 }
0x1101   : > { %v2333_v10 = vpop.f32.mrf.mxu1 }
0x1102   : > { %v2338_v29 = vadd.f32 %v2333_v10, %v2299_v9  ;;  %v2296_v12 = vpop.f32.mrf.mxu0 }
0x1103   : > { %v2361_v56 = vpop.f32.mrf.mxu2  ;;  %v2300_v14 = vadd.f32 %v2761_v30, %v2296_v12 }
0x1104   : > { %v2366_v11 = vadd.f32 %v2361_v56, %v2338_v29 }
0x1106   : > { %v2368_v13 = vmax.f32 %v2366_v11, 0.0 }
0x1108   : > { %v2370_v61 = vsel %vm1065_vm6, %v2368_v13, 0.0 }
0x1109   : > { %v2335_v15 = vpop.f32.mrf.mxu1  ;;  %2371 = vadd.xlane.f32.xlu1 %v2370_v61 }
0x110a   : > { %v2339_v16 = vadd.f32 %v2335_v15, %v2300_v14 }
0x110b   : > { %v2363_v18 = vpop.f32.mrf.mxu2 }
0x110c   : > { %v2367_v19 = vadd.f32 %v2363_v18, %v2339_v16 }
0x110e   : > { %v2369_v20 = vmax.f32 %v2367_v19, 0.0 }
0x1110   : > { %v2373_v21 = vsel %vm1065_vm6, %v2369_v20, 0.0 }
0x1111   : > { %2374 = vadd.xlane.f32.xlu2 %v2373_v21 }
0x117c   : > { %v2372_v4 = vpop.xlane.xlu1 %2371 }
0x117d   : > { %v2383_v17 = vmul.f32 %v2382_v32, %v2372_v4 }
0x117f   : > { %v2385_v33 = vsub.f32 %v2368_v13, %v2383_v17 }
0x1181   : > { %v2387_v34 = vmul.f32 %v2385_v33, %v2385_v33 }
0x1183   : > { %v2389_v35 = vsel %vm1065_vm6, %v2387_v34, 0.0 }
0x1184   : > { %2390 = vadd.xlane.f32.xlu2 %v2389_v35  ;;  %v2375_v36 = vpop.xlane.xlu2 %2374 }
0x1185   : > { %v2384_v37 = vmul.f32 %v2382_v32, %v2375_v36 }
0x1187   : > { %v2386_v38 = vsub.f32 %v2369_v20, %v2384_v37 }
0x1189   : > { %v2388_v41 = vmul.f32 %v2386_v38, %v2386_v38 }
0x118b   : > { %v2392_v42 = vsel %vm1065_vm6, %v2388_v41, 0.0 }
0x118c   : > { %2393 = vadd.xlane.f32.xlu2 %v2392_v42 }
0x11f7   : > { %v2391_v43 = vpop.xlane.xlu2 %2390 }
0x11f8   : > { %v2395_v44 = vmul.f32 %v2391_v43, %v2382_v32 }
0x11fa   : > { %v2397_v45 = vadd.f32 1e-05, %v2395_v44 }
0x11fc   : > { %2846 = vrsqrt.f32 %v2397_v45  ;;  %vm2405_vm4 = vweird.f32 %v2397_v45 }
0x11ff   : > { %v2394_v46 = vpop.xlane.xlu2 %2393 }
0x1200   : > { %v2396_v47 = vmul.f32 %v2394_v46, %v2382_v32 }
0x1202   : > { %v2847_v48 = vpop.eup %2846  ;;  %v2398_v25 = vadd.f32 1e-05, %v2396_v47 }
0x1203   : > { %v2400_v50 = vmul.f32 %v2847_v48, %v2397_v45  ;;  %vm2406_vm3 = vweird.f32 %v2847_v48 }
0x1204   : > { %2848 = vrsqrt.f32 %v2398_v25  ;;  %vm2407_vm7 = vmor %vm2405_vm4, %vm2406_vm3  ;;  %vm2415_vm10 = vweird.f32 %v2398_v25 }
0x1205   : > { %v2401_v51 = vmul.f32 %v2847_v48, %v2400_v50 }
0x1207   : > { %v2402_v52 = vmul.f32 0.5, %v2401_v51 }
0x1209   : > { %v2403_v53 = vsub.f32 1.5, %v2402_v52 }
0x120a   : > { %v2849_v54 = vpop.eup %2848 }
0x120b   : > { %v2404_v55 = vmul.f32 %v2847_v48, %v2403_v53  ;;  %v2410_v31 = vmul.f32 %v2849_v54, %v2398_v25  ;;  %vm2416_vm9 = vweird.f32 %v2849_v54 }
0x120c   : > { %vm2417_vm11 = vmor %vm2415_vm10, %vm2416_vm9 }
0x120d   : > { %v2408_v57 = vsel %vm2407_vm7, %v2847_v48, %v2404_v55  ;;  %v2411_v58 = vmul.f32 %v2849_v54, %v2410_v31 }
0x120e   : > { %v2419_v60 = vmul.f32 %v2408_v57, %v2385_v33 }
0x120f   : > { %v2412_v49 = vmul.f32 0.5, %v2411_v58 }
0x1210   : > { %v2424_v62 = vmul.f32 %v2762_v40, %v2419_v60 }
0x1211   : > { %v2413_v63 = vsub.f32 1.5, %v2412_v49 }
0x1212   : > { %v2429_v0 = vadd.f32 %v2763_v59, %v2424_v62 }
0x1213   : > { %v2414_v1 = vmul.f32 %v2849_v54, %v2413_v63 }
0x1214   : > { %2431 = vst.msk [vmem:[%s771_s27] sm:$0xff] %vm1065_vm6, %v2429_v0 }
0x1215   : > { %v2418_v2 = vsel %vm2417_vm11, %v2849_v54, %v2414_v1 }
0x1216   : > { %v2420_v3 = vmul.f32 %v2418_v2, %v2386_v38 }
0x1218   : > { %v2425_v5 = vmul.f32 %v2762_v40, %v2420_v3 }
0x121a   : > { %v2430_v28 = vadd.f32 %v2763_v59, %v2425_v5 }
0x121c   : > { %2432 = vst.msk [vmem:[%s771_s27 + $0x8] sm:$0xff] %vm1065_vm6, %v2430_v28 }
0x121d PF: > { %s3579_s5 = sld [smem:[#allocation12_spill]] }
0x1223   : > { %s36_s4 = sadd.s32 1, %s3579_s5  }
0x1224   : > { %p33_p7 = scmp.ge.s32.totalorder %s36_s4, 4  }
0x1226   :  { %35 = sbr.rel (!%p33_p7) target bundleno = 15 (0xf), region = 159 }
0x122b   :  { %2454 = vsyncpa [#allocation3], 1 }
0x122c   :  { %2456 = vsyncpa [#allocation3 + $0x1], 1 }
0x122d   :  { %2457 = vsyncpa [#allocation5], 1 }
0x122e   :  { %2458 = vsyncpa [#allocation8], 1 }

</bundles_post_ra>
